<compile_context>
chip_gen: v7x
topology: tpu7x:2x2x1
jax: 0.10.0
libtpu: 0.0.40
codegen_flags: <defaults>
</compile_context>

<pallas_src>
import math
import functools

import jax
import jax.numpy as jnp
from jax.experimental import pallas as pl
from jax.experimental.pallas import tpu as pltpu

_EPS = 1e-5
_LANE = 128
_VMEM = pl.BlockSpec(memory_space=pltpu.MemorySpace.VMEM)
EXPANSION = 1  # BasicBlock


def _round_up(x, m):
    return (x + m - 1) // m * m


def _pick_tile_k(k_pad):
    """Largest multiple of 128 that divides k_pad and is <= 1152."""
    best = 128
    t = 128
    while t <= min(k_pad, 1152):
        if k_pad % t == 0:
            best = t
        t += 128
    return best


# ----------------------------- Pallas kernels --------------------------------
def _conv_bn_kernel(a_ref, w_ref, g_ref, b_ref, o_ref, acc_ref, *, relu):
    # Tiled matmul (bf16 in, f32 acc) + fused train-mode BatchNorm(+ReLU) epilogue.
    k = pl.program_id(1)

    @pl.when(k == 0)
    def _():
        acc_ref[...] = jnp.zeros_like(acc_ref)

    acc_ref[...] += jnp.dot(a_ref[...], w_ref[...],
                            preferred_element_type=jnp.float32)

    @pl.when(k == pl.num_programs(1) - 1)
    def _():
        y = acc_ref[...]
        mean = jnp.mean(y, axis=0, keepdims=True)
        var = jnp.mean(jnp.square(y - mean), axis=0, keepdims=True)
        out = (y - mean) * jax.lax.rsqrt(var + _EPS) * g_ref[...] + b_ref[...]
        if relu:
            out = jnp.maximum(out, 0.0)
        o_ref[...] = out


def _conv_bn_res_kernel(a_ref, w_ref, g_ref, b_ref, r_ref, o_ref, acc_ref, *,
                        relu):
    # Same as above, plus fused residual add (BasicBlock tail).
    k = pl.program_id(1)

    @pl.when(k == 0)
    def _():
        acc_ref[...] = jnp.zeros_like(acc_ref)

    acc_ref[...] += jnp.dot(a_ref[...], w_ref[...],
                            preferred_element_type=jnp.float32)

    @pl.when(k == pl.num_programs(1) - 1)
    def _():
        y = acc_ref[...]
        mean = jnp.mean(y, axis=0, keepdims=True)
        var = jnp.mean(jnp.square(y - mean), axis=0, keepdims=True)
        out = (y - mean) * jax.lax.rsqrt(var + _EPS) * g_ref[...] + b_ref[...]
        out = out + r_ref[...]
        if relu:
            out = jnp.maximum(out, 0.0)
        o_ref[...] = out


def _maxpool_kernel(*refs):
    # 9 tap refs + 1 output ref; chain of elementwise maxima on the VPU.
    o_ref = refs[-1]
    acc = refs[0][...]
    for r in refs[1:-1]:
        acc = jnp.maximum(acc, r[...])
    o_ref[...] = acc


# ----------------------------- kernel wrappers --------------------------------
def _fused_conv_bn(patches, wmat, gamma2d, beta2d, *, residual=None, relu):
    """patches: (M, K_pad) bf16; wmat: (K_pad, N_pad) bf16;
    gamma2d/beta2d: (1, N_pad) f32; residual: (M, N_pad) f32 or None.
    Returns (M, N_pad) f32 = relu?(BN(patches @ wmat) [+ residual])."""
    M, K_pad = patches.shape
    _, N_pad = wmat.shape
    tk = _pick_tile_k(K_pad)
    tn = 256 if N_pad % 256 == 0 else 128
    grid = (N_pad // tn, K_pad // tk)

    a_spec = pl.BlockSpec((M, tk), lambda j, k: (0, k))
    w_spec = pl.BlockSpec((tk, tn), lambda j, k: (k, j))
    v_spec = pl.BlockSpec((1, tn), lambda j, k: (0, j))
    o_spec = pl.BlockSpec((M, tn), lambda j, k: (0, j))

    if residual is None:
        kern = functools.partial(_conv_bn_kernel, relu=relu)
        in_specs = [a_spec, w_spec, v_spec, v_spec]
        args = (patches, wmat, gamma2d, beta2d)
    else:
        kern = functools.partial(_conv_bn_res_kernel, relu=relu)
        in_specs = [a_spec, w_spec, v_spec, v_spec, o_spec]
        args = (patches, wmat, gamma2d, beta2d, residual)

    return pl.pallas_call(
        kern,
        out_shape=jax.ShapeDtypeStruct((M, N_pad), jnp.float32),
        grid_spec=pltpu.PrefetchScalarGridSpec(
            num_scalar_prefetch=0,
            grid=grid,
            in_specs=in_specs,
            out_specs=o_spec,
            scratch_shapes=[pltpu.VMEM((M, tn), jnp.float32)]),
        compiler_params=pltpu.CompilerParams(
            dimension_semantics=("parallel", "arbitrary")),
    )(*args)


def _im2col(x, kh, kw, stride, padding, dilation, k_pad):
    """x: (N, H, W, Cin) f32 -> bf16 patch matrix (M, k_pad), plus Ho, Wo."""
    N, H, W, Cin = x.shape
    Ho = (H + 2 * padding - dilation * (kh - 1) - 1) // stride + 1
    Wo = (W + 2 * padding - dilation * (kw - 1) - 1) // stride + 1
    xb = x.astype(jnp.bfloat16)
    if padding:
        xb = jnp.pad(xb, ((0, 0), (padding, padding), (padding, padding),
                          (0, 0)))
    if kh == 1 and kw == 1:
        patches = xb[:, ::stride, ::stride, :].reshape(N * Ho * Wo, Cin)
    else:
        taps = []
        for i in range(kh):
            for j in range(kw):
                hi, wi = i * dilation, j * dilation
                taps.append(xb[:, hi:hi + stride * (Ho - 1) + 1:stride,
                               wi:wi + stride * (Wo - 1) + 1:stride, :])
        # feature order (kh, kw, cin) matches the precomputed weight matrix
        patches = jnp.stack(taps, axis=3).reshape(N * Ho * Wo, kh * kw * Cin)
    K = kh * kw * Cin
    if k_pad > K:
        patches = jnp.pad(patches, ((0, 0), (0, k_pad - K)))
    return patches, Ho, Wo


def conv_bn(x, conv_p, bn_p, *, stride, padding, dilation, relu,
            residual=None):
    """Fused Conv2d(bias=False) + train-mode BatchNorm (+residual) (+ReLU)."""
    N = x.shape[0]
    patches, Ho, Wo = _im2col(x, conv_p["kh"], conv_p["kw"], stride, padding,
                              dilation, conv_p["k_pad"])
    M = N * Ho * Wo
    n_pad = conv_p["n_pad"]
    res = None
    if residual is not None:
        res = residual.reshape(M, -1).astype(jnp.float32)
        if res.shape[1] < n_pad:
            res = jnp.pad(res, ((0, 0), (0, n_pad - res.shape[1])))
    y = _fused_conv_bn(patches, conv_p["wmat"], bn_p["gamma"], bn_p["beta"],
                       residual=res, relu=relu)
    y = y[:, :conv_p["cout"]]
    return y.reshape(N, Ho, Wo, conv_p["cout"])


def maxpool_3x3_s2_p1(x):
    N, H, W, C = x.shape
    Ho = (H + 2 - 3) // 2 + 1
    Wo = (W + 2 - 3) // 2 + 1
    M = N * Ho * Wo
    xp = jnp.pad(x, ((0, 0), (1, 1), (1, 1), (0, 0)),
                 constant_values=-jnp.inf)
    # Lane-dense packing for narrow-channel stages (C=64 -> (M*C/128, 128)).
    if C < _LANE and (M * C) % _LANE == 0:
        shp = (M * C // _LANE, _LANE)
    else:
        shp = (M, C)
    taps = []
    for i in range(3):
        for j in range(3):
            t = xp[:, i:i + 2 * (Ho - 1) + 1:2, j:j + 2 * (Wo - 1) + 1:2, :]
            taps.append(t.reshape(shp))
    out = pl.pallas_call(
        _maxpool_kernel,
        out_shape=jax.ShapeDtypeStruct(shp, jnp.float32),
        in_specs=[_VMEM] * 9,
        out_specs=_VMEM,
    )(*taps)
    return out.reshape(N, Ho, Wo, C)


# --------------------------- parameters (deterministic) ----------------------
def _make_conv(key, cout, cin, k):
    # torch init: normal(0, sqrt(2 / (k*k*cout))); weight matrix precomputed:
    # transpose(2,3,1,0).reshape(K, Cout), padded to (K_pad, N_pad), bf16.
    n = k * k * cout
    w = math.sqrt(2.0 / n) * jax.random.normal(key, (cout, cin, k, k),
                                               jnp.float32)
    K = k * k * cin
    k_pad = _round_up(K, _LANE)
    n_pad = _round_up(cout, _LANE)
    wmat = jnp.transpose(w, (2, 3, 1, 0)).reshape(K, cout)
    wmat = jnp.pad(wmat, ((0, k_pad - K), (0, n_pad - cout)))
    return {"wmat": wmat.astype(jnp.bfloat16), "kh": k, "kw": k, "cin": cin,
            "cout": cout, "k_pad": k_pad, "n_pad": n_pad}


def _make_bn(c, n_pad):
    # torch init: weight=1, bias=0; padded channels are inert (zero output).
    gamma = jnp.pad(jnp.ones((1, c), jnp.float32), ((0, 0), (0, n_pad - c)))
    beta = jnp.zeros((1, n_pad), jnp.float32)
    return {"gamma": gamma, "beta": beta}


def init_params(key, layers):
    keys = iter(jax.random.split(key, 128))
    conv1 = _make_conv(next(keys), 64, 3, 7)
    params = {"conv1": conv1, "bn1": _make_bn(64, conv1["n_pad"])}
    inplanes = 64

    def make_layer(planes, blocks, stride, dilation):
        nonlocal inplanes
        layer = []
        for b in range(blocks):
            blk_stride = stride if b == 0 else 1
            blk_dil = 1 if b == 0 else dilation  # first block gets dilation=1
            c1 = _make_conv(next(keys), planes, inplanes, 3)
            c2 = _make_conv(next(keys), planes, planes, 3)
            blk = {"stride": blk_stride, "dilation": blk_dil,
                   "conv1": c1, "bn1": _make_bn(planes, c1["n_pad"]),
                   "conv2": c2, "bn2": _make_bn(planes, c2["n_pad"])}
            if b == 0 and (stride != 1 or inplanes != planes * EXPANSION):
                ds = _make_conv(next(keys), planes * EXPANSION, inplanes, 1)
                blk["ds_conv"] = ds
                blk["ds_bn"] = _make_bn(planes * EXPANSION, ds["n_pad"])
            layer.append(blk)
            inplanes = planes * EXPANSION
        return layer

    params["layer1"] = make_layer(64, layers[0], 1, 1)
    params["layer2"] = make_layer(128, layers[1], 2, 1)
    params["layer3"] = make_layer(256, layers[2], 1, 2)
    params["layer4"] = make_layer(512, layers[3], 1, 4)
    return params


# --------------------------------- forward -----------------------------------
def basic_block(x, p):
    # conv1 -> bn1 -> relu  (fused)
    out = conv_bn(x, p["conv1"], p["bn1"], stride=p["stride"],
                  padding=p["dilation"], dilation=p["dilation"], relu=True)
    # downsample path (fused conv+bn, no relu)
    if "ds_conv" in p:
        residual = conv_bn(x, p["ds_conv"], p["ds_bn"], stride=p["stride"],
                           padding=0, dilation=1, relu=False)
    else:
        residual = x
    # conv2 -> bn2 -> (+residual) -> relu  (fused)
    return conv_bn(out, p["conv2"], p["bn2"], stride=1,
                   padding=p["dilation"], dilation=p["dilation"], relu=True,
                   residual=residual)


def my_resnet_forward(params, x_nchw):
    # forward() of MyResNet: conv1 -> bn1 -> relu -> maxpool -> layer1..4
    # (avgpool / fc are built in __init__ but NOT used in forward; not applied)
    x = jnp.transpose(x_nchw, (0, 2, 3, 1)).astype(jnp.float32)  # NCHW -> NHWC
    x = conv_bn(x, params["conv1"], params["bn1"], stride=2, padding=3,
                dilation=1, relu=True)
    x = maxpool_3x3_s2_p1(x)
    for name in ("layer1", "layer2", "layer3", "layer4"):
        for blk in params[name]:
            x = basic_block(x, blk)
    return jnp.transpose(x, (0, 3, 1, 2))  # back to NCHW


if __name__ == "__main__":
    key = jax.random.PRNGKey(0)
    pkey, xkey = jax.random.split(key)
    layers = (1, 1, 2, 2)  # small synthetic depth config (BasicBlock blocks)
    params = init_params(pkey, layers)
    x = jax.random.normal(xkey, (2, 3, 32, 32), jnp.float32)  # NCHW like torch
    out = my_resnet_forward(params, x)
    out = jax.block_until_ready(out)
    assert out.shape == (2, 512, 4, 4), out.shape
    assert bool(jnp.all(jnp.isfinite(out)))
    print("KERNEL_OK")
</pallas_src>

<mosaic_0001>
module attributes {stable_mosaic.version = 11 : i64} {
  func.func @_conv_bn_kernel(%arg0: i32, %arg1: i32, %arg2: memref<512x256xbf16, #tpu.memory_space<vmem>>, %arg3: memref<256x128xbf16, #tpu.memory_space<vmem>>, %arg4: memref<1x128xf32, #tpu.memory_space<vmem>>, %arg5: memref<1x128xf32, #tpu.memory_space<vmem>>, %arg6: memref<512x128xf32, #tpu.memory_space<vmem>>, %arg7: memref<512x128xf32, #tpu.memory_space<vmem>>) attributes {dimension_semantics = [#tpu.dimension_semantics<parallel>, #tpu.dimension_semantics<arbitrary>], iteration_bounds = array<i64: 1, 1>, scalar_prefetch = 0 : i64, scratch_operands = 1 : i64, tpu.core_type = #tpu.core_type<tc>, window_params = [{transform_indices = @transform_0, window_bounds = array<i64: 512, 256>}, {transform_indices = @transform_1, window_bounds = array<i64: 256, 128>}, {transform_indices = @transform_2, window_bounds = array<i64: 1, 128>}, {transform_indices = @transform_3, window_bounds = array<i64: 1, 128>}, {transform_indices = @transform_4, window_bounds = array<i64: 512, 128>}]} {
    %c0_i32 = arith.constant 0 : i32
    %0 = arith.cmpi eq, %arg1, %c0_i32 : i32
    %1 = arith.extui %0 : i1 to i32
    %c0_i32_0 = arith.constant 0 : i32
    %2 = arith.cmpi ne, %1, %c0_i32_0 : i32
    scf.if %2 {
      %cst_10 = arith.constant 0.000000e+00 : f32
      %12 = vector.broadcast %cst_10 : f32 to vector<512x128xf32>
      %c0_11 = arith.constant 0 : index
      %c0_12 = arith.constant 0 : index
      %13 = vector.load %arg7[%c0_11, %c0_12] : memref<512x128xf32, #tpu.memory_space<vmem>>, vector<512x128xf32>
      tpu.vector_store %arg7[%c0_11, %c0_12], %12 {strides = array<i32>} : memref<512x128xf32, #tpu.memory_space<vmem>>, vector<512x128xf32>,
    } else {
    }
    %c0 = arith.constant 0 : index
    %c0_1 = arith.constant 0 : index
    %3 = vector.load %arg7[%c0, %c0_1] : memref<512x128xf32, #tpu.memory_space<vmem>>, vector<512x128xf32>
    %c0_2 = arith.constant 0 : index
    %c0_3 = arith.constant 0 : index
    %4 = vector.load %arg2[%c0_2, %c0_3] : memref<512x256xbf16, #tpu.memory_space<vmem>>, vector<512x256xbf16>
    %c0_4 = arith.constant 0 : index
    %c0_5 = arith.constant 0 : index
    %5 = vector.load %arg3[%c0_4, %c0_5] : memref<256x128xbf16, #tpu.memory_space<vmem>>, vector<256x128xbf16>
    %cst = arith.constant dense<0.000000e+00> : vector<512x128xf32>
    %6 = tpu.matmul %4, %5, %cst {dimension_numbers = #tpu.dot_dimension_numbers<[1], [0], [0], [1], [0, 0, 1, 1], [], []>} : vector<512x256xbf16>, vector<256x128xbf16>, vector<512x128xf32> -> vector<512x128xf32>
    %7 = arith.addf %3, %6 : vector<512x128xf32>
    %c0_6 = arith.constant 0 : index
    %c0_7 = arith.constant 0 : index
    %8 = vector.load %arg7[%c0_6, %c0_7] : memref<512x128xf32, #tpu.memory_space<vmem>>, vector<512x128xf32>
    tpu.vector_store %arg7[%c0_6, %c0_7], %7 {strides = array<i32>} : memref<512x128xf32, #tpu.memory_space<vmem>>, vector<512x128xf32>,
    %c0_i32_8 = arith.constant 0 : i32
    %9 = arith.cmpi eq, %arg1, %c0_i32_8 : i32
    %10 = arith.extui %9 : i1 to i32
    %c0_i32_9 = arith.constant 0 : i32
    %11 = arith.cmpi ne, %10, %c0_i32_9 : i32
    scf.if %11 {
      %c0_10 = arith.constant 0 : index
      %c0_11 = arith.constant 0 : index
      %12 = vector.load %arg7[%c0_10, %c0_11] : memref<512x128xf32, #tpu.memory_space<vmem>>, vector<512x128xf32>
      %cst_12 = arith.constant dense<0.000000e+00> : vector<128xf32>
      %13 = vector.multi_reduction <add>, %12, %cst_12 [0] : vector<512x128xf32> to vector<128xf32>
      %14 = vector.shape_cast %13 : vector<128xf32> to vector<1x128xf32>
      %cst_13 = arith.constant 5.120000e+02 : f32
      %15 = vector.broadcast %cst_13 : f32 to vector<1x128xf32>
      %16 = arith.divf %14, %15 : vector<1x128xf32>
      %17 = vector.broadcast %16 : vector<1x128xf32> to vector<512x128xf32>
      %18 = arith.subf %12, %17 : vector<512x128xf32>
      %19 = arith.mulf %18, %18 : vector<512x128xf32>
      %cst_14 = arith.constant dense<0.000000e+00> : vector<128xf32>
      %20 = vector.multi_reduction <add>, %19, %cst_14 [0] : vector<512x128xf32> to vector<128xf32>
      %21 = vector.shape_cast %20 : vector<128xf32> to vector<1x128xf32>
      %cst_15 = arith.constant 5.120000e+02 : f32
      %22 = vector.broadcast %cst_15 : f32 to vector<1x128xf32>
      %23 = arith.divf %21, %22 : vector<1x128xf32>
      %24 = vector.broadcast %16 : vector<1x128xf32> to vector<512x128xf32>
      %25 = arith.subf %12, %24 : vector<512x128xf32>
      %cst_16 = arith.constant 9.99999974E-6 : f32
      %26 = vector.broadcast %cst_16 : f32 to vector<1x128xf32>
      %27 = arith.addf %23, %26 : vector<1x128xf32>
      %28 = math.rsqrt %27 : vector<1x128xf32>
      %29 = vector.broadcast %28 : vector<1x128xf32> to vector<512x128xf32>
      %30 = arith.mulf %25, %29 : vector<512x128xf32>
      %c0_17 = arith.constant 0 : index
      %c0_18 = arith.constant 0 : index
      %31 = vector.load %arg4[%c0_17, %c0_18] : memref<1x128xf32, #tpu.memory_space<vmem>>, vector<1x128xf32>
      %32 = vector.broadcast %31 : vector<1x128xf32> to vector<512x128xf32>
      %33 = arith.mulf %30, %32 : vector<512x128xf32>
      %c0_19 = arith.constant 0 : index
      %c0_20 = arith.constant 0 : index
      %34 = vector.load %arg5[%c0_19, %c0_20] : memref<1x128xf32, #tpu.memory_space<vmem>>, vector<1x128xf32>
      %35 = vector.broadcast %34 : vector<1x128xf32> to vector<512x128xf32>
      %36 = arith.addf %33, %35 : vector<512x128xf32>
      %cst_21 = arith.constant 0.000000e+00 : f32
      %37 = vector.broadcast %cst_21 : f32 to vector<512x128xf32>
      %38 = arith.maximumf %36, %37 : vector<512x128xf32>
      %c0_22 = arith.constant 0 : index
      %c0_23 = arith.constant 0 : index
      %39 = vector.load %arg6[%c0_22, %c0_23] : memref<512x128xf32, #tpu.memory_space<vmem>>, vector<512x128xf32>
      tpu.vector_store %arg6[%c0_22, %c0_23], %38 {strides = array<i32>} : memref<512x128xf32, #tpu.memory_space<vmem>>, vector<512x128xf32>,
    } else {
    }
    return
  }
  func.func @transform_0(%arg0: i32, %arg1: i32) -> (i32, i32) {
    %c0_i32 = arith.constant 0 : i32
    %c0_i32_0 = arith.constant 0 : i32
    return %c0_i32, %arg1 : i32, i32
  }
  func.func @transform_1(%arg0: i32, %arg1: i32) -> (i32, i32) {
    %c0_i32 = arith.constant 0 : i32
    return %arg1, %arg0 : i32, i32
  }
  func.func @transform_2(%arg0: i32, %arg1: i32) -> (i32, i32) {
    %c0_i32 = arith.constant 0 : i32
    %c0_i32_0 = arith.constant 0 : i32
    return %c0_i32, %arg0 : i32, i32
  }
  func.func @transform_3(%arg0: i32, %arg1: i32) -> (i32, i32) {
    %c0_i32 = arith.constant 0 : i32
    %c0_i32_0 = arith.constant 0 : i32
    return %c0_i32, %arg0 : i32, i32
  }
  func.func @transform_4(%arg0: i32, %arg1: i32) -> (i32, i32) {
    %c0_i32 = arith.constant 0 : i32
    %c0_i32_0 = arith.constant 0 : i32
    return %c0_i32, %arg0 : i32, i32
  }
}

</mosaic_0001>

<bundles_post_ra>
// kernel: tpu_custom_call.1
= control target key start
LH: loop header
LB: loop body
LE: loop exit
PB: predicated region body
PF: predicated region fallthrough
CT: control target
= control target key end

     0   :  { %9 = vsyncpa [#allocation4], 0  ;;  %s3626_s0 = inlined_call_operand.hbm [shape: bf16[512,256], index: 0, kind: input, shape index: {}]   ;;  %s3627_s1 = inlined_call_operand.hbm [shape: bf16[256,128], index: 1, kind: input, shape index: {}]   ;;  %s3628_s2 = inlined_call_operand.vmem [shape: f32[1,128], index: 2, kind: input, shape index: {}]   ;;  %s3629_s3 = inlined_call_operand.vmem [shape: f32[1,128], index: 3, kind: input, shape index: {}]   ;;  %s3630_s4 = inlined_call_operand.hbm [shape: f32[512,128], index: 4, kind: output, shape index: {}]  }
   0x1   :  { %10 = vsyncpa [#allocation7], 0 }
   0x2   :  { %11 = vsyncpa [#allocation5], 0  ;;  %s2106_s15 = smov [#allocation3]   ;;  %s2034_s19 = scalar_lea.hbm %s3626_s0, 8192 }
   0x3   :  { %s17_s16 = sshll.u32 %s2106_s15, 4  ;;  %p2035_p0 = scmp.ne.s32.totalorder %s3626_s0, %s2034_s19  ;;  %s18_s16 = int_to_ptr.vmem [resolvable:$true] %s17_s16 }
   0x4   :  { %p2038_p1 = scmp.lt.u32.totalorder %s2034_s19, %s3626_s0 }
   0x6   :  { %p2040_p2 = pnand %p2038_p1, %p2035_p0 }
   0x8   :  { %2043 = shalt.err (!%p2040_p2)
}
   0x9   :  { %s2044_s24 = scalar_lea.vmem %s18_s16, 8192  ;;  %p2049_p4 = scmp.lt.s32.totalorder %s18_s16, %s18_s16 }
   0xa   :  { %p2045_p3 = scmp.ne.s32.totalorder %s18_s16, %s2044_s24  ;;  %p2050_p5 = scmp.lt.s32.totalorder %s2044_s24, %s2044_s24 }
   0xc   :  { %p2051_p6 = por %p2050_p5, %p2049_p4 }
   0xe   :  { %p2052_p7 = pnand %p2051_p6, %p2045_p3 }
  0x10   :  { %2055 = shalt.err (!%p2052_p7)
}
  0x11   :  { %s2107_s25 = smov 128   ;;  %s2108_s26 = smov 8  }
  0x12   :  { %23 = dma.hbm_to_vmem [thread:$0]  %s3626_s0, 8192, %s18_s16, [#allocation4], %s2107_s25, %s2107_s25, %s2108_s26  }
  0x13   :  { %s2109_s29 = smov [#allocation6]   ;;  %s2056_s7 = scalar_lea.hbm %s3627_s1, 2048 }
  0x14   :  { %s29_s30 = sshll.u32 %s2109_s29, 4  ;;  %p2057_p8 = scmp.ne.s32.totalorder %s3627_s1, %s2056_s7  ;;  %s30_s30 = int_to_ptr.vmem [resolvable:$true] %s29_s30 }
  0x15   :  { %p2060_p9 = scmp.lt.u32.totalorder %s2056_s7, %s3627_s1 }
  0x17   :  { %p2062_p10 = pnand %p2060_p9, %p2057_p8 }
  0x19   :  { %2065 = shalt.err (!%p2062_p10)
}
  0x1a   :  { %s2066_s12 = scalar_lea.vmem %s30_s30, 2048  ;;  %p2071_p12 = scmp.lt.s32.totalorder %s30_s30, %s30_s30 }
  0x1b   :  { %p2067_p11 = scmp.ne.s32.totalorder %s30_s30, %s2066_s12  ;;  %p2072_p13 = scmp.lt.s32.totalorder %s2066_s12, %s2066_s12 }
  0x1d   :  { %p2073_p0 = por %p2072_p13, %p2071_p12 }
  0x1f   :  { %p2074_p1 = pnand %p2073_p0, %p2067_p11 }
  0x21   :  { %2077 = shalt.err (!%p2074_p1)
}
  0x22   :  { %s2110_s0 = smov 64   ;;  %s2111_s13 = smov 4  }
  0x23   :  { %35 = dma.hbm_to_vmem [thread:$0]  %s3627_s1, 2048, %s30_s30, [#allocation7], %s2110_s0, %s2110_s0, %s2111_s13  }
  0x24   :  { %2100 = dma.done.wait [#allocation4], 8192  }
  0x25   :  { %2101 = vsyncadd [#allocation4], 4294959104 }
  0x26   :  { %2102 = dma.done.wait [#allocation7], 2048  }
  0x27   :  { %2103 = vsyncadd [#allocation7], 4294965248  ;;  %v2112_v0 = vmov 0   ;;  %v1920_v1 = vld [vmem:[#allocation6] sm:$0xff]   ;;  %v1921_v2 = vld [vmem:[#allocation6 + $0x8] sm:$0xff]  }
  0x28   :  { %691 = vmatprep.subr.bf16.mxu0 %v2112_v0  ;;  %1880 = vmatprep.subr.bf16.mxu1 %v2112_v0  ;;  %v1922_v3 = vld [vmem:[#allocation6 + $0x10] sm:$0xff]   ;;  %v1923_v4 = vld [vmem:[#allocation6 + $0x18] sm:$0xff]   ;;  %v1924_v5 = vld [vmem:[#allocation6 + $0x20] sm:$0xff]  }
  0x29   :  { %692 = vmatpush1.bf16.msra.mxu0 %v1920_v1  ;;  %1896 = vmatpush1.bf16.msra.mxu1 %v1920_v1  ;;  %v1938_v6 = vld [vmem:[#allocation3 + $0x4] ss:$8 sps:$4 sm:$0xff]   ;;  %v1926_v8 = vld [vmem:[#allocation6 + $0x30] sm:$0xff]   ;;  %v1927_v9 = vld [vmem:[#allocation6 + $0x38] sm:$0xff]  }
  0x2a   :  { %693 = vmatprep.subr.bf16.mxu0 %v2112_v0  ;;  %1881 = vmatprep.subr.bf16.mxu1 %v2112_v0  ;;  %v1925_v7 = vld [vmem:[#allocation6 + $0x28] sm:$0xff]   ;;  %v1928_v11 = vld [vmem:[#allocation6 + $0x40] sm:$0xff]   ;;  %v1930_v13 = vld [vmem:[#allocation6 + $0x50] sm:$0xff]  }
  0x2b   :  { %723 = vmatprep.mubr.bf16.mxu0 %v1938_v6  ;;  %v1962_v10 = vld [vmem:[#allocation3 + $0x104] ss:$8 sps:$4 sm:$0xff]   ;;  %v1931_v14 = vld [vmem:[#allocation6 + $0x58] sm:$0xff]   ;;  %v1934_v17 = vld [vmem:[#allocation6 + $0x70] sm:$0xff]  }
  0x2c   :  { %851 = vmatprep.mubr.bf16.mxu1 %v1962_v10  ;;  %v1929_v12 = vld [vmem:[#allocation6 + $0x48] sm:$0xff]   ;;  %v1932_v15 = vld [vmem:[#allocation6 + $0x60] sm:$0xff]   ;;  %v1935_v18 = vld [vmem:[#allocation6 + $0x78] sm:$0xff]  }
  0x2d   :  { %694 = vmatpush1.bf16.msra.mxu0 %v1921_v2  ;;  %1897 = vmatpush1.bf16.msra.mxu1 %v1921_v2  ;;  %v1933_v16 = vld [vmem:[#allocation6 + $0x68] sm:$0xff]   ;;  %v1939_v21 = vld [vmem:[#allocation3 + $0x14] ss:$8 sps:$4 sm:$0xff]   ;;  %v1941_v23 = vld [vmem:[#allocation3 + $0x10] ss:$8 sps:$4 sm:$0xff]  }
  0x2e   :  { %695 = vmatprep.subr.bf16.mxu0 %v2112_v0  ;;  %1882 = vmatprep.subr.bf16.mxu1 %v2112_v0  ;;  %v1936_v19 = vld [vmem:[#allocation3] ss:$8 sps:$4 sm:$0xff]   ;;  %v1966_v22 = vld [vmem:[#allocation3 + $0x114] ss:$8 sps:$4 sm:$0xff]   ;;  %v1968_v24 = vld [vmem:[#allocation3 + $0x110] ss:$8 sps:$4 sm:$0xff]  }
  0x2f   :  { %v1960_v20 = vld [vmem:[#allocation3 + $0x100] ss:$8 sps:$4 sm:$0xff]   ;;  %v1942_v25 = vld [vmem:[#allocation3 + $0x24] ss:$8 sps:$4 sm:$0xff]   ;;  %v1945_v29 = vld [vmem:[#allocation3 + $0x34] ss:$8 sps:$4 sm:$0xff]  }
  0x30   :  { %v1972_v26 = vld [vmem:[#allocation3 + $0x124] ss:$8 sps:$4 sm:$0xff]   ;;  %v1944_v27 = vld [vmem:[#allocation3 + $0x20] ss:$8 sps:$4 sm:$0xff]   ;;  %v1978_v30 = vld [vmem:[#allocation3 + $0x134] ss:$8 sps:$4 sm:$0xff]  }
  0x31   :  { %696 = vmatpush1.bf16.msra.mxu0 %v1922_v3  ;;  %1898 = vmatpush1.bf16.msra.mxu1 %v1922_v3  ;;  %v1974_v28 = vld [vmem:[#allocation3 + $0x120] ss:$8 sps:$4 sm:$0xff]   ;;  %v1947_v31 = vld [vmem:[#allocation3 + $0x30] ss:$8 sps:$4 sm:$0xff]   ;;  %v1948_v33 = vld [vmem:[#allocation3 + $0x44] ss:$8 sps:$4 sm:$0xff]  }
  0x32   :  { %697 = vmatprep.subr.bf16.mxu0 %v2112_v0  ;;  %1883 = vmatprep.subr.bf16.mxu1 %v2112_v0  ;;  %v1980_v32 = vld [vmem:[#allocation3 + $0x130] ss:$8 sps:$4 sm:$0xff]   ;;  %v1984_v34 = vld [vmem:[#allocation3 + $0x144] ss:$8 sps:$4 sm:$0xff]   ;;  %v1950_v35 = vld [vmem:[#allocation3 + $0x40] ss:$8 sps:$4 sm:$0xff]  }
  0x33   :  { %v1986_v36 = vld [vmem:[#allocation3 + $0x140] ss:$8 sps:$4 sm:$0xff]   ;;  %v1951_v37 = vld [vmem:[#allocation3 + $0x54] ss:$8 sps:$4 sm:$0xff]   ;;  %v1953_v39 = vld [vmem:[#allocation3 + $0x50] ss:$8 sps:$4 sm:$0xff]  }
  0x34   :  { %v1990_v38 = vld [vmem:[#allocation3 + $0x154] ss:$8 sps:$4 sm:$0xff]   ;;  %v1992_v40 = vld [vmem:[#allocation3 + $0x150] ss:$8 sps:$4 sm:$0xff]   ;;  %v1954_v41 = vld [vmem:[#allocation3 + $0x64] ss:$8 sps:$4 sm:$0xff]  }
  0x35   :  { %698 = vmatpush1.bf16.msra.mxu0 %v1923_v4  ;;  %1899 = vmatpush1.bf16.msra.mxu1 %v1923_v4  ;;  %v1996_v42 = vld [vmem:[#allocation3 + $0x164] ss:$8 sps:$4 sm:$0xff]   ;;  %v1956_v43 = vld [vmem:[#allocation3 + $0x60] ss:$8 sps:$4 sm:$0xff]   ;;  %v1957_v45 = vld [vmem:[#allocation3 + $0x74] ss:$8 sps:$4 sm:$0xff]  }
  0x36   :  { %699 = vmatprep.subr.bf16.mxu0 %v2112_v0  ;;  %1884 = vmatprep.subr.bf16.mxu1 %v2112_v0  ;;  %v1998_v44 = vld [vmem:[#allocation3 + $0x160] ss:$8 sps:$4 sm:$0xff]   ;;  %v2002_v46 = vld [vmem:[#allocation3 + $0x174] ss:$8 sps:$4 sm:$0xff]   ;;  %v1959_v47 = vld [vmem:[#allocation3 + $0x70] ss:$8 sps:$4 sm:$0xff]  }
  0x37   :  { %v2004_v48 = vld [vmem:[#allocation3 + $0x170] ss:$8 sps:$4 sm:$0xff]   ;;  %v1963_v49 = vld [vmem:[#allocation3 + $0x84] ss:$8 sps:$4 sm:$0xff]   ;;  %v1965_v51 = vld [vmem:[#allocation3 + $0x80] ss:$8 sps:$4 sm:$0xff]  }
  0x38   :  { %v2008_v50 = vld [vmem:[#allocation3 + $0x184] ss:$8 sps:$4 sm:$0xff]   ;;  %v2010_v52 = vld [vmem:[#allocation3 + $0x180] ss:$8 sps:$4 sm:$0xff]   ;;  %v1969_v53 = vld [vmem:[#allocation3 + $0x94] ss:$8 sps:$4 sm:$0xff]  }
  0x39   :  { %700 = vmatpush1.bf16.msra.mxu0 %v1924_v5  ;;  %1900 = vmatpush1.bf16.msra.mxu1 %v1924_v5  ;;  %v2011_v54 = vld [vmem:[#allocation3 + $0x194] ss:$8 sps:$4 sm:$0xff]   ;;  %v1971_v55 = vld [vmem:[#allocation3 + $0x90] ss:$8 sps:$4 sm:$0xff]   ;;  %v1975_v57 = vld [vmem:[#allocation3 + $0xa4] ss:$8 sps:$4 sm:$0xff]  }
  0x3a   :  { %701 = vmatprep.subr.bf16.mxu0 %v2112_v0  ;;  %1885 = vmatprep.subr.bf16.mxu1 %v2112_v0  ;;  %v2013_v56 = vld [vmem:[#allocation3 + $0x190] ss:$8 sps:$4 sm:$0xff]   ;;  %v2014_v58 = vld [vmem:[#allocation3 + $0x1a4] ss:$8 sps:$4 sm:$0xff]   ;;  %v1977_v59 = vld [vmem:[#allocation3 + $0xa0] ss:$8 sps:$4 sm:$0xff]  }
  0x3b   :  { %v2016_v60 = vld [vmem:[#allocation3 + $0x1a0] ss:$8 sps:$4 sm:$0xff]   ;;  %v1981_v61 = vld [vmem:[#allocation3 + $0xb4] ss:$8 sps:$4 sm:$0xff]   ;;  %v1983_v63 = vld [vmem:[#allocation3 + $0xb0] ss:$8 sps:$4 sm:$0xff]  }
  0x3c   :  { %v2017_v62 = vld [vmem:[#allocation3 + $0x1b4] ss:$8 sps:$4 sm:$0xff]   ;;  %v1987_v1 = vld [vmem:[#allocation3 + $0xc4] ss:$8 sps:$4 sm:$0xff]   ;;  %v1989_v3 = vld [vmem:[#allocation3 + $0xc0] ss:$8 sps:$4 sm:$0xff]  }
  0x3d   :  { %702 = vmatpush1.bf16.msra.mxu0 %v1925_v7  ;;  %1901 = vmatpush1.bf16.msra.mxu1 %v1925_v7  ;;  %v2020_v2 = vld [vmem:[#allocation3 + $0x1c4] ss:$8 sps:$4 sm:$0xff]   ;;  %v2022_v4 = vld [vmem:[#allocation3 + $0x1c0] ss:$8 sps:$4 sm:$0xff]   ;;  %v1993_v5 = vld [vmem:[#allocation3 + $0xd4] ss:$8 sps:$4 sm:$0xff]  }
  0x3e   :  { %703 = vmatprep.subr.bf16.mxu0 %v2112_v0  ;;  %1886 = vmatprep.subr.bf16.mxu1 %v2112_v0  ;;  %v2023_v6 = vld [vmem:[#allocation3 + $0x1d4] ss:$8 sps:$4 sm:$0xff]   ;;  %v1995_v7 = vld [vmem:[#allocation3 + $0xd0] ss:$8 sps:$4 sm:$0xff]   ;;  %v2026_v10 = vld [vmem:[#allocation3 + $0x1e4] ss:$8 sps:$4 sm:$0xff]  }
  0x41   :  { %704 = vmatpush1.bf16.msra.mxu0 %v1926_v8  ;;  %1902 = vmatpush1.bf16.msra.mxu1 %v1926_v8  ;;  %v2025_v8 = vld [vmem:[#allocation3 + $0x1d0] ss:$8 sps:$4 sm:$0xff]  }
  0x42   :  { %705 = vmatprep.subr.bf16.mxu0 %v2112_v0  ;;  %1887 = vmatprep.subr.bf16.mxu1 %v2112_v0 }
  0x45   :  { %706 = vmatpush1.bf16.msra.mxu0 %v1927_v9  ;;  %1903 = vmatpush1.bf16.msra.mxu1 %v1927_v9  ;;  %v1999_v9 = vld [vmem:[#allocation3 + $0xe4] ss:$8 sps:$4 sm:$0xff]  }
  0x46   :  { %707 = vmatprep.subr.bf16.mxu0 %v2112_v0  ;;  %1888 = vmatprep.subr.bf16.mxu1 %v2112_v0 }
  0x49   :  { %708 = vmatpush1.bf16.msra.mxu0 %v1928_v11  ;;  %1904 = vmatpush1.bf16.msra.mxu1 %v1928_v11  ;;  %v2001_v11 = vld [vmem:[#allocation3 + $0xe0] ss:$8 sps:$4 sm:$0xff]  }
  0x4a   :  { %709 = vmatprep.subr.bf16.mxu0 %v2112_v0  ;;  %1889 = vmatprep.subr.bf16.mxu1 %v2112_v0 }
  0x4d   :  { %710 = vmatpush1.bf16.msra.mxu0 %v1929_v12  ;;  %1905 = vmatpush1.bf16.msra.mxu1 %v1929_v12  ;;  %v2028_v12 = vld [vmem:[#allocation3 + $0x1e0] ss:$8 sps:$4 sm:$0xff]  }
  0x4e   :  { %711 = vmatprep.subr.bf16.mxu0 %v2112_v0  ;;  %1890 = vmatprep.subr.bf16.mxu1 %v2112_v0 }
  0x51   :  { %712 = vmatpush1.bf16.msra.mxu0 %v1930_v13  ;;  %1906 = vmatpush1.bf16.msra.mxu1 %v1930_v13  ;;  %v2005_v13 = vld [vmem:[#allocation3 + $0xf4] ss:$8 sps:$4 sm:$0xff]  }
  0x52   :  { %713 = vmatprep.subr.bf16.mxu0 %v2112_v0  ;;  %1891 = vmatprep.subr.bf16.mxu1 %v2112_v0 }
  0x55   :  { %714 = vmatpush1.bf16.msra.mxu0 %v1931_v14  ;;  %1907 = vmatpush1.bf16.msra.mxu1 %v1931_v14  ;;  %v2029_v14 = vld [vmem:[#allocation3 + $0x1f4] ss:$8 sps:$4 sm:$0xff]  }
  0x56   :  { %715 = vmatprep.subr.bf16.mxu0 %v2112_v0  ;;  %1892 = vmatprep.subr.bf16.mxu1 %v2112_v0 }
  0x59   :  { %716 = vmatpush1.bf16.msra.mxu0 %v1932_v15  ;;  %1908 = vmatpush1.bf16.msra.mxu1 %v1932_v15  ;;  %v2007_v15 = vld [vmem:[#allocation3 + $0xf0] ss:$8 sps:$4 sm:$0xff]  }
  0x5a   :  { %717 = vmatprep.subr.bf16.mxu0 %v2112_v0  ;;  %1893 = vmatprep.subr.bf16.mxu1 %v2112_v0 }
  0x5d   :  { %718 = vmatpush1.bf16.msra.mxu0 %v1933_v16  ;;  %1909 = vmatpush1.bf16.msra.mxu1 %v1933_v16  ;;  %v2031_v16 = vld [vmem:[#allocation3 + $0x1f0] ss:$8 sps:$4 sm:$0xff]  }
  0x5e   :  { %719 = vmatprep.subr.bf16.mxu0 %v2112_v0  ;;  %1894 = vmatprep.subr.bf16.mxu1 %v2112_v0 }
  0x61   :  { %720 = vmatpush1.bf16.msra.mxu0 %v1934_v17  ;;  %1910 = vmatpush1.bf16.msra.mxu1 %v1934_v17 }
  0x62   :  { %721 = vmatprep.subr.bf16.mxu0 %v2112_v0  ;;  %1895 = vmatprep.subr.bf16.mxu1 %v2112_v0  ;;  %v2019_v0 = vld [vmem:[#allocation3 + $0x1b0] ss:$8 sps:$4 sm:$0xff]  }
  0x65   :  { %722 = vmatpush1.bf16.msra.mxu0 %v1935_v18  ;;  %1911 = vmatpush1.bf16.msra.mxu1 %v1935_v18 }
  0x68   :  { %724 = vmatmul.mubr.bf16.vlgmr.msra.gmra.mrb[0].mxu0 %v1936_v19  ;;  %852 = vmatmul.mubr.bf16.vlgmr.msra.gmra.mrb[0].mxu1 %v1960_v20 }
  0x69   :  { %731 = vmatprep.mubr.bf16.mxu0 %v1939_v21  ;;  %859 = vmatprep.mubr.bf16.mxu1 %v1966_v22 }
  0x70   :  { %732 = vmatmul.mubr.bf16.gmra.mrb[4].mxu0 %v1941_v23  ;;  %860 = vmatmul.mubr.bf16.gmra.mrb[4].mxu1 %v1968_v24 }
  0x71   :  { %739 = vmatprep.mubr.bf16.mxu0 %v1942_v25  ;;  %867 = vmatprep.mubr.bf16.mxu1 %v1972_v26 }
  0x78   :  { %740 = vmatmul.mubr.bf16.gmra.mrb[8].mxu0 %v1944_v27  ;;  %868 = vmatmul.mubr.bf16.gmra.mrb[8].mxu1 %v1974_v28 }
  0x79   :  { %747 = vmatprep.mubr.bf16.mxu0 %v1945_v29  ;;  %875 = vmatprep.mubr.bf16.mxu1 %v1978_v30 }
  0x80   :  { %748 = vmatmul.mubr.bf16.gmra.mrb[12].mxu0 %v1947_v31  ;;  %876 = vmatmul.mubr.bf16.gmra.mrb[12].mxu1 %v1980_v32 }
  0x81   :  { %755 = vmatprep.mubr.bf16.mxu0 %v1948_v33  ;;  %883 = vmatprep.mubr.bf16.mxu1 %v1984_v34 }
  0x88   :  { %756 = vmatmul.mubr.bf16.gmra.mrb[16].mxu0 %v1950_v35  ;;  %884 = vmatmul.mubr.bf16.gmra.mrb[16].mxu1 %v1986_v36 }
  0x89   :  { %763 = vmatprep.mubr.bf16.mxu0 %v1951_v37  ;;  %891 = vmatprep.mubr.bf16.mxu1 %v1990_v38 }
  0x90   :  { %764 = vmatmul.mubr.bf16.gmra.mrb[20].mxu0 %v1953_v39  ;;  %892 = vmatmul.mubr.bf16.gmra.mrb[20].mxu1 %v1992_v40 }
  0x91   :  { %771 = vmatprep.mubr.bf16.mxu0 %v1954_v41  ;;  %899 = vmatprep.mubr.bf16.mxu1 %v1996_v42 }
  0x98   :  { %772 = vmatmul.mubr.bf16.gmra.mrb[24].mxu0 %v1956_v43  ;;  %900 = vmatmul.mubr.bf16.gmra.mrb[24].mxu1 %v1998_v44 }
  0x99   :  { %779 = vmatprep.mubr.bf16.mxu0 %v1957_v45  ;;  %907 = vmatprep.mubr.bf16.mxu1 %v2002_v46 }
  0xa0   :  { %780 = vmatmul.mubr.bf16.gmra.mrb[28].mxu0 %v1959_v47  ;;  %908 = vmatmul.mubr.bf16.gmra.mrb[28].mxu1 %v2004_v48 }
  0xa1   :  { %787 = vmatprep.mubr.bf16.mxu0 %v1963_v49  ;;  %915 = vmatprep.mubr.bf16.mxu1 %v2008_v50 }
  0xa8   :  { %788 = vmatmul.mubr.bf16.gmra.mrb[32].mxu0 %v1965_v51  ;;  %916 = vmatmul.mubr.bf16.gmra.mrb[32].mxu1 %v2010_v52 }
  0xa9   :  { %795 = vmatprep.mubr.bf16.mxu0 %v1969_v53  ;;  %923 = vmatprep.mubr.bf16.mxu1 %v2011_v54 }
  0xb0   :  { %796 = vmatmul.mubr.bf16.gmra.mrb[36].mxu0 %v1971_v55  ;;  %924 = vmatmul.mubr.bf16.gmra.mrb[36].mxu1 %v2013_v56 }
  0xb1   :  { %803 = vmatprep.mubr.bf16.mxu0 %v1975_v57  ;;  %931 = vmatprep.mubr.bf16.mxu1 %v2014_v58 }
  0xb8   :  { %804 = vmatmul.mubr.bf16.gmra.mrb[40].mxu0 %v1977_v59  ;;  %932 = vmatmul.mubr.bf16.gmra.mrb[40].mxu1 %v2016_v60 }
  0xb9   :  { %811 = vmatprep.mubr.bf16.mxu0 %v1981_v61  ;;  %939 = vmatprep.mubr.bf16.mxu1 %v2017_v62 }
  0xc0   :  { %812 = vmatmul.mubr.bf16.gmra.mrb[44].mxu0 %v1983_v63  ;;  %940 = vmatmul.mubr.bf16.gmra.mrb[44].mxu1 %v2019_v0 }
  0xc1   :  { %819 = vmatprep.mubr.bf16.mxu0 %v1987_v1  ;;  %947 = vmatprep.mubr.bf16.mxu1 %v2020_v2 }
  0xc8   :  { %820 = vmatmul.mubr.bf16.gmra.mrb[48].mxu0 %v1989_v3  ;;  %948 = vmatmul.mubr.bf16.gmra.mrb[48].mxu1 %v2022_v4 }
  0xc9   :  { %827 = vmatprep.mubr.bf16.mxu0 %v1993_v5  ;;  %955 = vmatprep.mubr.bf16.mxu1 %v2023_v6 }
  0xd0   :  { %828 = vmatmul.mubr.bf16.gmra.mrb[52].mxu0 %v1995_v7  ;;  %956 = vmatmul.mubr.bf16.gmra.mrb[52].mxu1 %v2025_v8 }
  0xd1   :  { %835 = vmatprep.mubr.bf16.mxu0 %v1999_v9  ;;  %963 = vmatprep.mubr.bf16.mxu1 %v2026_v10 }
  0xd8   :  { %836 = vmatmul.mubr.bf16.gmra.mrb[56].mxu0 %v2001_v11  ;;  %964 = vmatmul.mubr.bf16.gmra.mrb[56].mxu1 %v2028_v12 }
  0xd9   :  { %843 = vmatprep.mubr.bf16.mxu0 %v2005_v13  ;;  %971 = vmatprep.mubr.bf16.mxu1 %v2029_v14 }
  0xe0   :  { %844 = vmatmul.mubr.bf16.gmra.mrb[60].mxu0 %v2007_v15  ;;  %972 = vmatmul.mubr.bf16.gmra.mrb[60].mxu1 %v2031_v16 }
 0x13b   :  { %v2198_v17 = vpop.f32.mrb[0].mxu0  ;;  %v2200_v18 = vpop.f32.mrb[0].mxu1 }
 0x13c   :  { %v727_v19 = vpop.f32.mrb[1].mxu0  ;;  %v855_v20 = vpop.f32.mrb[1].mxu1 }
 0x13d   :  { %v2202_v21 = vpop.f32.mrb[2].mxu0  ;;  %v2204_v22 = vpop.f32.mrb[2].mxu1 }
 0x13e   :  { %v1175_v23 = vadd.f32 %v2202_v21, %v2198_v17  ;;  %v730_v24 = vpop.f32.mrb[3].mxu0  ;;  %v858_v25 = vpop.f32.mrb[3].mxu1 }
 0x143   :  { %v2208_v26 = vpop.f32.mrb[4].mxu0  ;;  %v2210_v27 = vpop.f32.mrb[4].mxu1 }
 0x144   :  { %v1176_v28 = vadd.f32 %v1175_v23, %v2208_v26  ;;  %v735_v29 = vpop.f32.mrb[5].mxu0  ;;  %v863_v30 = vpop.f32.mrb[5].mxu1 }
 0x145   :  { %v2213_v31 = vpop.f32.mrb[6].mxu0  ;;  %v2215_v32 = vpop.f32.mrb[6].mxu1 }
 0x146   :  { %v1177_v33 = vadd.f32 %v1176_v28, %v2213_v31  ;;  %v738_v34 = vpop.f32.mrb[7].mxu0  ;;  %v866_v35 = vpop.f32.mrb[7].mxu1 }
 0x14b   :  { %v2218_v36 = vpop.f32.mrb[8].mxu0  ;;  %v2220_v37 = vpop.f32.mrb[8].mxu1 }
 0x14c   :  { %v1178_v38 = vadd.f32 %v1177_v33, %v2218_v36  ;;  %v743_v39 = vpop.f32.mrb[9].mxu0  ;;  %v871_v40 = vpop.f32.mrb[9].mxu1 }
 0x14d   :  { %v2223_v41 = vpop.f32.mrb[10].mxu0  ;;  %v2225_v42 = vpop.f32.mrb[10].mxu1 }
 0x14e   :  { %v1179_v43 = vadd.f32 %v1178_v38, %v2223_v41  ;;  %v746_v44 = vpop.f32.mrb[11].mxu0  ;;  %v874_v45 = vpop.f32.mrb[11].mxu1 }
 0x153   :  { %v2228_v46 = vpop.f32.mrb[12].mxu0  ;;  %v2230_v47 = vpop.f32.mrb[12].mxu1 }
 0x154   :  { %v1180_v48 = vadd.f32 %v1179_v43, %v2228_v46  ;;  %v751_v49 = vpop.f32.mrb[13].mxu0  ;;  %v879_v50 = vpop.f32.mrb[13].mxu1 }
 0x155   :  { %v2233_v51 = vpop.f32.mrb[14].mxu0  ;;  %v2235_v52 = vpop.f32.mrb[14].mxu1 }
 0x156   :  { %v1181_v53 = vadd.f32 %v1180_v48, %v2233_v51  ;;  %v754_v54 = vpop.f32.mrb[15].mxu0  ;;  %v882_v55 = vpop.f32.mrb[15].mxu1 }
 0x15b   :  { %v2238_v56 = vpop.f32.mrb[16].mxu0  ;;  %v2240_v57 = vpop.f32.mrb[16].mxu1 }
 0x15c   :  { %v1182_v58 = vadd.f32 %v1181_v53, %v2238_v56  ;;  %v759_v59 = vpop.f32.mrb[17].mxu0  ;;  %v887_v60 = vpop.f32.mrb[17].mxu1 }
 0x15d   :  { %v2243_v61 = vpop.f32.mrb[18].mxu0  ;;  %v2245_v62 = vpop.f32.mrb[18].mxu1 }
 0x15e   :  { %v1183_v63 = vadd.f32 %v1182_v58, %v2243_v61  ;;  %v762_v0 = vpop.f32.mrb[19].mxu0  ;;  %v890_v1 = vpop.f32.mrb[19].mxu1 }
 0x163   :  { %v2248_v2 = vpop.f32.mrb[20].mxu0  ;;  %v2250_v3 = vpop.f32.mrb[20].mxu1 }
 0x164   :  { %v1184_v4 = vadd.f32 %v1183_v63, %v2248_v2  ;;  %v767_v5 = vpop.f32.mrb[21].mxu0  ;;  %v895_v6 = vpop.f32.mrb[21].mxu1 }
 0x165   :  { %v2253_v7 = vpop.f32.mrb[22].mxu0  ;;  %v2255_v8 = vpop.f32.mrb[22].mxu1 }
 0x166   :  { %v1185_v9 = vadd.f32 %v1184_v4, %v2253_v7  ;;  %v770_v10 = vpop.f32.mrb[23].mxu0  ;;  %v898_v11 = vpop.f32.mrb[23].mxu1 }
 0x16b   :  { %v2258_v12 = vpop.f32.mrb[24].mxu0  ;;  %v2260_v13 = vpop.f32.mrb[24].mxu1 }
 0x16c   :  { %v1186_v14 = vadd.f32 %v1185_v9, %v2258_v12  ;;  %v775_v15 = vpop.f32.mrb[25].mxu0  ;;  %v903_v16 = vpop.f32.mrb[25].mxu1 }
 0x16d   :  { %v2263_v19 = vpop.f32.mrb[26].mxu0  ;;  %v2265_v20 = vpop.f32.mrb[26].mxu1 }
 0x16e   :  { %v1187_v23 = vadd.f32 %v1186_v14, %v2263_v19  ;;  %v778_v24 = vpop.f32.mrb[27].mxu0  ;;  %v906_v25 = vpop.f32.mrb[27].mxu1 }
 0x173   :  { %v2268_v28 = vpop.f32.mrb[28].mxu0  ;;  %v2270_v29 = vpop.f32.mrb[28].mxu1 }
 0x174   :  { %v1188_v30 = vadd.f32 %v1187_v23, %v2268_v28  ;;  %v783_v33 = vpop.f32.mrb[29].mxu0  ;;  %v911_v34 = vpop.f32.mrb[29].mxu1 }
 0x175   :  { %v2273_v35 = vpop.f32.mrb[30].mxu0  ;;  %v2275_v38 = vpop.f32.mrb[30].mxu1 }
 0x176   :  { %v1189_v39 = vadd.f32 %v1188_v30, %v2273_v35  ;;  %v786_v40 = vpop.f32.mrb[31].mxu0  ;;  %v914_v43 = vpop.f32.mrb[31].mxu1 }
 0x17b   :  { %v2278_v44 = vpop.f32.mrb[32].mxu0  ;;  %v2280_v45 = vpop.f32.mrb[32].mxu1 }
 0x17c   :  { %v1190_v48 = vadd.f32 %v1189_v39, %v2278_v44  ;;  %v791_v49 = vpop.f32.mrb[33].mxu0  ;;  %v919_v50 = vpop.f32.mrb[33].mxu1 }
 0x17d   :  { %v2283_v53 = vpop.f32.mrb[34].mxu0  ;;  %v2285_v54 = vpop.f32.mrb[34].mxu1 }
 0x17e   :  { %v1191_v55 = vadd.f32 %v1190_v48, %v2283_v53  ;;  %v794_v58 = vpop.f32.mrb[35].mxu0  ;;  %v922_v59 = vpop.f32.mrb[35].mxu1 }
 0x183   :  { %v2288_v60 = vpop.f32.mrb[36].mxu0  ;;  %v2290_v63 = vpop.f32.mrb[36].mxu1 }
 0x184   :  { %v1192_v0 = vadd.f32 %v1191_v55, %v2288_v60  ;;  %v799_v1 = vpop.f32.mrb[37].mxu0  ;;  %v927_v4 = vpop.f32.mrb[37].mxu1 }
 0x185   :  { %v2293_v5 = vpop.f32.mrb[38].mxu0  ;;  %v2295_v6 = vpop.f32.mrb[38].mxu1 }
 0x186   :  { %3673 = vst [vmem:[#allocation12_spill] sm:$0xff] %v2293_v5  ;;  %v1193_v9 = vadd.f32 %v1192_v0, %v2293_v5  ;;  %v802_v10 = vpop.f32.mrb[39].mxu0  ;;  %v930_v11 = vpop.f32.mrb[39].mxu1 }
 0x18b   :  { %v2298_v14 = vpop.f32.mrb[40].mxu0  ;;  %v2300_v15 = vpop.f32.mrb[40].mxu1 }
 0x18c   :  { %3674 = vst [vmem:[#allocation13_spill] sm:$0xff] %v2298_v14  ;;  %v1194_v16 = vadd.f32 %v1193_v9, %v2298_v14  ;;  %v807_v23 = vpop.f32.mrb[41].mxu0  ;;  %v935_v24 = vpop.f32.mrb[41].mxu1 }
 0x18d   :  { %v2303_v25 = vpop.f32.mrb[42].mxu0  ;;  %v2305_v30 = vpop.f32.mrb[42].mxu1 }
 0x18e   :  { %3675 = vst [vmem:[#allocation14_spill] sm:$0xff] %v2303_v25  ;;  %v1195_v33 = vadd.f32 %v1194_v16, %v2303_v25  ;;  %v810_v34 = vpop.f32.mrb[43].mxu0  ;;  %v938_v39 = vpop.f32.mrb[43].mxu1 }
 0x193   :  { %v2308_v40 = vpop.f32.mrb[44].mxu0  ;;  %v2310_v43 = vpop.f32.mrb[44].mxu1 }
 0x194   :  { %3676 = vst [vmem:[#allocation15_spill] sm:$0xff] %v2308_v40  ;;  %3677 = vst [vmem:[#allocation16_spill] sm:$0xff] %v2310_v43  ;;  %v1196_v48 = vadd.f32 %v1195_v33, %v2308_v40  ;;  %v815_v49 = vpop.f32.mrb[45].mxu0  ;;  %v943_v50 = vpop.f32.mrb[45].mxu1 }
 0x195   :  { %v2313_v55 = vpop.f32.mrb[46].mxu0  ;;  %v2315_v58 = vpop.f32.mrb[46].mxu1 }
 0x196   :  { %3678 = vst [vmem:[#allocation17_spill] sm:$0xff] %v2313_v55  ;;  %3679 = vst [vmem:[#allocation18_spill] sm:$0xff] %v2315_v58  ;;  %v1197_v59 = vadd.f32 %v1196_v48, %v2313_v55  ;;  %v818_v0 = vpop.f32.mrb[47].mxu0  ;;  %v946_v1 = vpop.f32.mrb[47].mxu1 }
 0x19b   :  { %v2318_v4 = vpop.f32.mrb[48].mxu0  ;;  %v2320_v9 = vpop.f32.mrb[48].mxu1 }
 0x19c   :  { %3680 = vst [vmem:[#allocation19_spill] sm:$0xff] %v2318_v4  ;;  %3681 = vst [vmem:[#allocation20_spill] sm:$0xff] %v2320_v9  ;;  %v1198_v10 = vadd.f32 %v1197_v59, %v2318_v4  ;;  %v823_v11 = vpop.f32.mrb[49].mxu0  ;;  %v951_v16 = vpop.f32.mrb[49].mxu1 }
 0x19d   :  { %v2323_v23 = vpop.f32.mrb[50].mxu0  ;;  %v2325_v24 = vpop.f32.mrb[50].mxu1 }
 0x19e   :  { %3682 = vst [vmem:[#allocation21_spill] sm:$0xff] %v2323_v23  ;;  %v1199_v33 = vadd.f32 %v1198_v10, %v2323_v23  ;;  %v826_v34 = vpop.f32.mrb[51].mxu0  ;;  %v954_v39 = vpop.f32.mrb[51].mxu1 }
 0x1a3   :  { %v2328_v49 = vpop.f32.mrb[52].mxu0  ;;  %v2330_v48 = vpop.f32.mrb[52].mxu1 }
 0x1a4   :  { %3683 = vst [vmem:[#allocation22_spill] sm:$0xff] %v2328_v49  ;;  %v1200_v50 = vadd.f32 %v1199_v33, %v2328_v49  ;;  %v831_v0 = vpop.f32.mrb[53].mxu0  ;;  %v959_v1 = vpop.f32.mrb[53].mxu1 }
 0x1a5   :  { %v2333_v55 = vpop.f32.mrb[54].mxu0  ;;  %v2335_v59 = vpop.f32.mrb[54].mxu1 }
 0x1a6   :  { %3684 = vst [vmem:[#allocation23_spill] sm:$0xff] %v2333_v55  ;;  %v1201_v11 = vadd.f32 %v1200_v50, %v2333_v55  ;;  %v834_v16 = vpop.f32.mrb[55].mxu0  ;;  %v962_v4 = vpop.f32.mrb[55].mxu1 }
 0x1ab   :  { %v2338_v40 = vpop.f32.mrb[56].mxu0  ;;  %v2340_v10 = vpop.f32.mrb[56].mxu1 }
 0x1ac   :  { %3685 = vst [vmem:[#allocation24_spill] sm:$0xff] %v2338_v40  ;;  %v1202_v34 = vadd.f32 %v1201_v11, %v2338_v40  ;;  %v839_v39 = vpop.f32.mrb[57].mxu0  ;;  %v967_v23 = vpop.f32.mrb[57].mxu1 }
 0x1ad   :  { %v2343_v25 = vpop.f32.mrb[58].mxu0  ;;  %v2345_v33 = vpop.f32.mrb[58].mxu1 }
 0x1ae   :  { %3686 = vst [vmem:[#allocation25_spill] sm:$0xff] %v2343_v25  ;;  %v1203_v0 = vadd.f32 %v1202_v34, %v2343_v25  ;;  %v842_v1 = vpop.f32.mrb[59].mxu0  ;;  %v970_v49 = vpop.f32.mrb[59].mxu1 }
 0x1b3   :  { %v2348_v14 = vpop.f32.mrb[60].mxu0  ;;  %v2350_v50 = vpop.f32.mrb[60].mxu1 }
 0x1b4   :  { %3687 = vst [vmem:[#allocation26_spill] sm:$0xff] %v2348_v14  ;;  %v1204_v4 = vadd.f32 %v1203_v0, %v2348_v14  ;;  %v847_v16 = vpop.f32.mrb[61].mxu0  ;;  %v975_v55 = vpop.f32.mrb[61].mxu1 }
 0x1b5   :  { %v2353_v5 = vpop.f32.mrb[62].mxu0  ;;  %v2355_v11 = vpop.f32.mrb[62].mxu1 }
 0x1b6   :  { %v1205_v23 = vadd.f32 %v1204_v4, %v2353_v5  ;;  %v850_v39 = vpop.f32.mrb[63].mxu0  ;;  %v978_v40 = vpop.f32.mrb[63].mxu1 }
 0x1b8   :  { %v1206_v34 = vadd.f32 %v1205_v23, %v2200_v18 }
 0x1ba   :  { %v1207_v49 = vadd.f32 %v1206_v34, %v2204_v22 }
 0x1bc   :  { %v1208_v1 = vadd.f32 %v1207_v49, %v2210_v27 }
 0x1be   :  { %v1209_v25 = vadd.f32 %v1208_v1, %v2215_v32 }
 0x1c0   :  { %v1210_v0 = vadd.f32 %v1209_v25, %v2220_v37 }
 0x1c2   :  { %v1211_v55 = vadd.f32 %v1210_v0, %v2225_v42 }
 0x1c4   :  { %v1212_v16 = vadd.f32 %v1211_v55, %v2230_v47 }
 0x1c6   :  { %v1213_v14 = vadd.f32 %v1212_v16, %v2235_v52 }
 0x1c8   :  { %v1214_v4 = vadd.f32 %v1213_v14, %v2240_v57 }
 0x1ca   :  { %v1215_v40 = vadd.f32 %v1214_v4, %v2245_v62 }
 0x1cc   :  { %v1216_v23 = vadd.f32 %v1215_v40, %v2250_v3 }
 0x1ce   :  { %v1217_v39 = vadd.f32 %v1216_v23, %v2255_v8 }
 0x1d0   :  { %v1218_v34 = vadd.f32 %v1217_v39, %v2260_v13 }
 0x1d2   :  { %v1219_v49 = vadd.f32 %v1218_v34, %v2265_v20 }
 0x1d4   :  { %v1220_v25 = vadd.f32 %v1219_v49, %v2270_v29 }
 0x1d6   :  { %v1221_v1 = vadd.f32 %v1220_v25, %v2275_v38 }
 0x1d8   :  { %v1222_v0 = vadd.f32 %v1221_v1, %v2280_v45 }
 0x1da   :  { %v1223_v55 = vadd.f32 %v1222_v0, %v2285_v54 }
 0x1dc   :  { %v1224_v14 = vadd.f32 %v1223_v55, %v2290_v63 }
 0x1de   :  { %v1225_v16 = vadd.f32 %v1224_v14, %v2295_v6 }
 0x1e0   :  { %v1226_v4 = vadd.f32 %v1225_v16, %v2300_v15 }
 0x1e2   :  { %v1227_v40 = vadd.f32 %v1226_v4, %v2305_v30 }
 0x1e4   :  { %v1228_v23 = vadd.f32 %v1227_v40, %v2310_v43 }
 0x1e6   :  { %v1229_v39 = vadd.f32 %v1228_v23, %v2315_v58 }
 0x1e8   :  { %v1230_v34 = vadd.f32 %v1229_v39, %v2320_v9 }
 0x1ea   :  { %v1231_v49 = vadd.f32 %v1230_v34, %v2325_v24 }
 0x1ec   :  { %v1232_v25 = vadd.f32 %v1231_v49, %v2330_v48 }
 0x1ee   :  { %v1233_v1 = vadd.f32 %v1232_v25, %v2335_v59 }
 0x1f0   :  { %v1234_v0 = vadd.f32 %v1233_v1, %v2340_v10 }
 0x1f2   :  { %v1235_v55 = vadd.f32 %v1234_v0, %v2345_v33  ;;  %v3695_v0 = vld [vmem:[#allocation13_spill] sm:$0xff] }
 0x1f4   :  { %v1236_v14 = vadd.f32 %v1235_v55, %v2350_v50  ;;  %v3696_v55 = vld [vmem:[#allocation14_spill] sm:$0xff] }
 0x1f6   :  { %v1237_v16 = vadd.f32 %v1236_v14, %v2355_v11  ;;  %v3697_v14 = vld [vmem:[#allocation15_spill] sm:$0xff] }
 0x1f8   :  { %v1238_v4 = vrot.slane %v1237_v16, 4 }
 0x1fa   :  { %v1239_v40 = vadd.f32 %v1238_v4, %v1237_v16  ;;  %v3699_v16 = vld [vmem:[#allocation17_spill] sm:$0xff]  ;;  %v3701_v4 = vld [vmem:[#allocation19_spill] sm:$0xff] }
 0x1fc   :  { %v1240_v43 = vrot.slane %v1239_v40, 2 }
 0x1fe   :  { %v1241_v23 = vadd.f32 %v1240_v43, %v1239_v40 }
 0x200   :  { %v1242_v58 = vrot.slane %v1241_v23, 1 }
 0x202   :  { %v1243_v39 = vadd.f32 %v1242_v58, %v1241_v23  ;;  %v3693_v58 = vld [vmem:[#allocation12_spill] sm:$0xff]  ;;  %v3703_v23 = vld [vmem:[#allocation21_spill] sm:$0xff] }
 0x204   :  { %v2390_v9 = vmul.f32 0.001953125, %v1243_v39 }
 0x206   :  { %v2394_v34 = vsub.f32 %v2198_v17, %v2390_v9  ;;  %v2398_v49 = vsub.f32 %v2202_v21, %v2390_v9  ;;  %v2402_v25 = vsub.f32 %v2208_v26, %v2390_v9  ;;  %v2406_v1 = vsub.f32 %v2213_v31, %v2390_v9 }
 0x207   :  { %v2410_v43 = vsub.f32 %v2218_v36, %v2390_v9  ;;  %v2414_v17 = vsub.f32 %v2223_v41, %v2390_v9  ;;  %v2418_v21 = vsub.f32 %v2228_v46, %v2390_v9  ;;  %v2422_v26 = vsub.f32 %v2233_v51, %v2390_v9 }
 0x208   :  { %3688 = vst [vmem:[#allocation27_spill] sm:$0xff] %v2394_v34  ;;  %3689 = vst [vmem:[#allocation28_spill] sm:$0xff] %v2398_v49  ;;  %v2426_v31 = vsub.f32 %v2238_v56, %v2390_v9  ;;  %v2430_v36 = vsub.f32 %v2243_v61, %v2390_v9  ;;  %v2434_v41 = vsub.f32 %v2248_v2, %v2390_v9 }
 0x209   :  { %3690 = vst [vmem:[#allocation29_spill] sm:$0xff] %v2402_v25  ;;  %v2438_v46 = vsub.f32 %v2253_v7, %v2390_v9  ;;  %v2442_v51 = vsub.f32 %v2258_v12, %v2390_v9  ;;  %v2446_v56 = vsub.f32 %v2263_v19, %v2390_v9  ;;  %v2450_v61 = vsub.f32 %v2268_v28, %v2390_v9 }
 0x20a   :  { %v2454_v2 = vsub.f32 %v2273_v35, %v2390_v9  ;;  %v2458_v7 = vsub.f32 %v2278_v44, %v2390_v9  ;;  %v2462_v12 = vsub.f32 %v2283_v53, %v2390_v9  ;;  %v2466_v19 = vsub.f32 %v2288_v60, %v2390_v9 }
 0x20b   :  { %v2470_v28 = vsub.f32 %v3693_v58, %v2390_v9  ;;  %v2474_v35 = vsub.f32 %v3695_v0, %v2390_v9  ;;  %v2478_v44 = vsub.f32 %v3696_v55, %v2390_v9  ;;  %v2482_v53 = vsub.f32 %v3697_v14, %v2390_v9  ;;  %v3704_v58 = vld [vmem:[#allocation22_spill] sm:$0xff]  ;;  %v3705_v55 = vld [vmem:[#allocation23_spill] sm:$0xff] }
 0x20c   :  { %3691 = vst [vmem:[#allocation30_spill] sm:$0xff] %v2462_v12  ;;  %3692 = vst [vmem:[#allocation31_spill] sm:$0xff] %v2466_v19  ;;  %v2486_v60 = vsub.f32 %v3699_v16, %v2390_v9  ;;  %v2490_v40 = vsub.f32 %v3701_v4, %v2390_v9  ;;  %v2494_v39 = vsub.f32 %v3703_v23, %v2390_v9 }
 0x20d   :  { %3694 = vst [vmem:[#allocation12_spill] sm:$0xff] %v2470_v28  ;;  %3698 = vst [vmem:[#allocation13_spill] sm:$0xff] %v2482_v53  ;;  %v2498_v0 = vsub.f32 %v3704_v58, %v2390_v9  ;;  %v2502_v14 = vsub.f32 %v3705_v55, %v2390_v9  ;;  %v3706_v53 = vld [vmem:[#allocation24_spill] sm:$0xff]  ;;  %v2518_v58 = vsub.f32 %v2353_v5, %v2390_v9 }
 0x20e   :  { %3700 = vst [vmem:[#allocation14_spill] sm:$0xff] %v2486_v60  ;;  %3702 = vst [vmem:[#allocation15_spill] sm:$0xff] %v2490_v40  ;;  %v2506_v16 = vsub.f32 %v3706_v53, %v2390_v9  ;;  %v3707_v60 = vld [vmem:[#allocation25_spill] sm:$0xff]  ;;  %v3708_v40 = vld [vmem:[#allocation26_spill] sm:$0xff]  ;;  %v2522_v55 = vsub.f32 %v2200_v18, %v2390_v9  ;;  %v2526_v53 = vsub.f32 %v2204_v22, %v2390_v9 }
 0x20f   :  { %v2510_v4 = vsub.f32 %v3707_v60, %v2390_v9  ;;  %v2514_v23 = vsub.f32 %v3708_v40, %v2390_v9  ;;  %v2530_v60 = vsub.f32 %v2210_v27, %v2390_v9  ;;  %v2534_v40 = vsub.f32 %v2215_v32, %v2390_v9 }
 0x210   :  { %v2538_v5 = vsub.f32 %v2220_v37, %v2390_v9  ;;  %v2542_v18 = vsub.f32 %v2225_v42, %v2390_v9  ;;  %v2546_v22 = vsub.f32 %v2230_v47, %v2390_v9  ;;  %v2550_v27 = vsub.f32 %v2235_v52, %v2390_v9 }
 0x211   :  { %v2554_v32 = vsub.f32 %v2240_v57, %v2390_v9  ;;  %v2558_v37 = vsub.f32 %v2245_v62, %v2390_v9  ;;  %v2562_v42 = vsub.f32 %v2250_v3, %v2390_v9  ;;  %v2566_v47 = vsub.f32 %v2255_v8, %v2390_v9 }
 0x212   :  { %v2570_v52 = vsub.f32 %v2260_v13, %v2390_v9  ;;  %v2574_v57 = vsub.f32 %v2265_v20, %v2390_v9  ;;  %v2578_v62 = vsub.f32 %v2270_v29, %v2390_v9  ;;  %v2582_v3 = vsub.f32 %v2275_v38, %v2390_v9 }
 0x213   :  { %3709 = vst [vmem:[#allocation17_spill] sm:$0xff] %v2566_v47  ;;  %v2586_v8 = vsub.f32 %v2280_v45, %v2390_v9  ;;  %v2590_v13 = vsub.f32 %v2285_v54, %v2390_v9  ;;  %v2594_v20 = vsub.f32 %v2290_v63, %v2390_v9  ;;  %v2598_v29 = vsub.f32 %v2295_v6, %v2390_v9 }
 0x214   :  { %3710 = vst [vmem:[#allocation19_spill] sm:$0xff] %v2570_v52  ;;  %3711 = vst [vmem:[#allocation21_spill] sm:$0xff] %v2574_v57  ;;  %v2602_v38 = vsub.f32 %v2300_v15, %v2390_v9  ;;  %v2606_v45 = vsub.f32 %v2305_v30, %v2390_v9  ;;  %v2622_v15 = vsub.f32 %v2325_v24, %v2390_v9 }
 0x215   :  { %3712 = vst [vmem:[#allocation22_spill] sm:$0xff] %v2586_v8  ;;  %3713 = vst [vmem:[#allocation23_spill] sm:$0xff] %v2590_v13  ;;  %v3716_v8 = vld [vmem:[#allocation16_spill] sm:$0xff]  ;;  %v3718_v13 = vld [vmem:[#allocation18_spill] sm:$0xff]  ;;  %v2626_v30 = vsub.f32 %v2330_v48, %v2390_v9  ;;  %v2642_v24 = vsub.f32 %v2350_v50, %v2390_v9  ;;  %v2646_v48 = vsub.f32 %v2355_v11, %v2390_v9 }
 0x216   :  { %3714 = vst [vmem:[#allocation24_spill] sm:$0xff] %v2594_v20  ;;  %3715 = vst [vmem:[#allocation25_spill] sm:$0xff] %v2606_v45  ;;  %v2610_v54 = vsub.f32 %v3716_v8, %v2390_v9  ;;  %v2614_v63 = vsub.f32 %v3718_v13, %v2390_v9  ;;  %v3720_v20 = vld [vmem:[#allocation20_spill] sm:$0xff]  ;;  %v2630_v8 = vsub.f32 %v2335_v59, %v2390_v9 }
 0x217   :  { %v2618_v6 = vsub.f32 %v3720_v20, %v2390_v9  ;;  %3722 = vst [vmem:[#allocation20_spill] sm:$0xff] %v2622_v15  ;;  %3723 = vst [vmem:[#allocation32_spill] sm:$0xff] %v2626_v30  ;;  %v2634_v13 = vsub.f32 %v2340_v10, %v2390_v9  ;;  %v2638_v20 = vsub.f32 %v2345_v33, %v2390_v9 }
 0x218   :  { %3717 = vst [vmem:[#allocation26_spill] sm:$0xff] %v2610_v54  ;;  %3719 = vst [vmem:[#allocation16_spill] sm:$0xff] %v2614_v63  ;;  %v1310_v59 = vmul.f32 %v2394_v34, %v2394_v34  ;;  %v1312_v10 = vmul.f32 %v2402_v25, %v2402_v25  ;;  %v1313_v33 = vmul.f32 %v2406_v1, %v2406_v1 }
 0x219   :  { %3721 = vst [vmem:[#allocation18_spill] sm:$0xff] %v2618_v6  ;;  %3724 = vst [vmem:[#allocation33_spill] sm:$0xff] %v2630_v8  ;;  %v1311_v8 = vmul.f32 %v2398_v49, %v2398_v49  ;;  %v1314_v50 = vmul.f32 %v2410_v43, %v2410_v43  ;;  %v1315_v9 = vmul.f32 %v2414_v17, %v2414_v17 }
 0x21a   :  { %3725 = vst [vmem:[#allocation34_spill] sm:$0xff] %v2634_v13  ;;  %3726 = vst [vmem:[#allocation35_spill] sm:$0xff] %v2638_v20  ;;  %v1316_v34 = vmul.f32 %v2418_v21, %v2418_v21  ;;  %v1317_v25 = vmul.f32 %v2422_v26, %v2422_v26 }
 0x21b   :  { %3727 = vst [vmem:[#allocation36_spill] sm:$0xff] %v2642_v24  ;;  %v1374_v13 = vadd.f32 %v1311_v8, %v1310_v59  ;;  %v1318_v59 = vmul.f32 %v2426_v31, %v2426_v31 }
 0x21d   :  { %v1375_v20 = vadd.f32 %v1374_v13, %v1312_v10  ;;  %v1319_v10 = vmul.f32 %v2430_v36, %v2430_v36 }
 0x21f   :  { %v1376_v24 = vadd.f32 %v1375_v20, %v1313_v33  ;;  %v1320_v33 = vmul.f32 %v2434_v41, %v2434_v41 }
 0x221   :  { %v1377_v11 = vadd.f32 %v1376_v24, %v1314_v50  ;;  %v1321_v50 = vmul.f32 %v2438_v46, %v2438_v46 }
 0x223   :  { %v1378_v49 = vadd.f32 %v1377_v11, %v1315_v9  ;;  %v1322_v11 = vmul.f32 %v2442_v51, %v2442_v51 }
 0x225   :  { %v1379_v8 = vadd.f32 %v1378_v49, %v1316_v34  ;;  %v1323_v49 = vmul.f32 %v2446_v56, %v2446_v56 }
 0x227   :  { %v1380_v13 = vadd.f32 %v1379_v8, %v1317_v25  ;;  %v1324_v8 = vmul.f32 %v2450_v61, %v2450_v61 }
 0x229   :  { %v1381_v20 = vadd.f32 %v1380_v13, %v1318_v59  ;;  %v1325_v13 = vmul.f32 %v2454_v2, %v2454_v2 }
 0x22b   :  { %v1382_v24 = vadd.f32 %v1381_v20, %v1319_v10  ;;  %v1326_v20 = vmul.f32 %v2458_v7, %v2458_v7 }
 0x22d   :  { %v1383_v9 = vadd.f32 %v1382_v24, %v1320_v33  ;;  %v1327_v24 = vmul.f32 %v2462_v12, %v2462_v12 }
 0x22f   :  { %v1384_v34 = vadd.f32 %v1383_v9, %v1321_v50  ;;  %v1328_v9 = vmul.f32 %v2466_v19, %v2466_v19 }
 0x231   :  { %v1385_v25 = vadd.f32 %v1384_v34, %v1322_v11  ;;  %v1329_v34 = vmul.f32 %v2470_v28, %v2470_v28 }
 0x233   :  { %v1386_v59 = vadd.f32 %v1385_v25, %v1323_v49  ;;  %v1330_v25 = vmul.f32 %v2474_v35, %v2474_v35 }
 0x235   :  { %v1387_v10 = vadd.f32 %v1386_v59, %v1324_v8  ;;  %v1331_v59 = vmul.f32 %v2478_v44, %v2478_v44 }
 0x237   :  { %v1388_v33 = vadd.f32 %v1387_v10, %v1325_v13  ;;  %v3728_v10 = vld [vmem:[#allocation13_spill] sm:$0xff] }
 0x238   :  { %v1332_v12 = vmul.f32 %v3728_v10, %v3728_v10 }
 0x239   :  { %v1389_v50 = vadd.f32 %v1388_v33, %v1326_v20  ;;  %v3729_v33 = vld [vmem:[#allocation14_spill] sm:$0xff] }
 0x23a   :  { %v1333_v19 = vmul.f32 %v3729_v33, %v3729_v33 }
 0x23b   :  { %v1390_v11 = vadd.f32 %v1389_v50, %v1327_v24  ;;  %v3730_v50 = vld [vmem:[#allocation15_spill] sm:$0xff] }
 0x23c   :  { %v1334_v28 = vmul.f32 %v3730_v50, %v3730_v50 }
 0x23d   :  { %v1391_v49 = vadd.f32 %v1390_v11, %v1328_v9  ;;  %v1335_v11 = vmul.f32 %v2494_v39, %v2494_v39 }
 0x23f   :  { %v1392_v8 = vadd.f32 %v1391_v49, %v1329_v34  ;;  %v1336_v49 = vmul.f32 %v2498_v0, %v2498_v0 }
 0x241   :  { %v1393_v13 = vadd.f32 %v1392_v8, %v1330_v25  ;;  %v1337_v8 = vmul.f32 %v2502_v14, %v2502_v14 }
 0x243   :  { %v1394_v20 = vadd.f32 %v1393_v13, %v1331_v59  ;;  %v1338_v13 = vmul.f32 %v2506_v16, %v2506_v16 }
 0x245   :  { %v1395_v24 = vadd.f32 %v1394_v20, %v1332_v12  ;;  %v1339_v20 = vmul.f32 %v2510_v4, %v2510_v4 }
 0x247   :  { %v1396_v9 = vadd.f32 %v1395_v24, %v1333_v19  ;;  %v1340_v24 = vmul.f32 %v2514_v23, %v2514_v23 }
 0x249   :  { %v1397_v34 = vadd.f32 %v1396_v9, %v1334_v28  ;;  %v1341_v9 = vmul.f32 %v2518_v58, %v2518_v58 }
 0x24b   :  { %v1398_v25 = vadd.f32 %v1397_v34, %v1335_v11  ;;  %v1342_v34 = vmul.f32 %v2522_v55, %v2522_v55 }
 0x24d   :  { %v1399_v59 = vadd.f32 %v1398_v25, %v1336_v49  ;;  %v1343_v25 = vmul.f32 %v2526_v53, %v2526_v53 }
 0x24f   :  { %v1400_v12 = vadd.f32 %v1399_v59, %v1337_v8  ;;  %v1344_v59 = vmul.f32 %v2530_v60, %v2530_v60 }
 0x251   :  { %v1401_v19 = vadd.f32 %v1400_v12, %v1338_v13  ;;  %v1345_v12 = vmul.f32 %v2534_v40, %v2534_v40 }
 0x253   :  { %v1402_v28 = vadd.f32 %v1401_v19, %v1339_v20  ;;  %v1346_v19 = vmul.f32 %v2538_v5, %v2538_v5 }
 0x255   :  { %v1403_v11 = vadd.f32 %v1402_v28, %v1340_v24  ;;  %v1347_v28 = vmul.f32 %v2542_v18, %v2542_v18 }
 0x257   :  { %v1404_v49 = vadd.f32 %v1403_v11, %v1341_v9  ;;  %v1348_v11 = vmul.f32 %v2546_v22, %v2546_v22 }
 0x259   :  { %v1405_v8 = vadd.f32 %v1404_v49, %v1342_v34  ;;  %v1349_v49 = vmul.f32 %v2550_v27, %v2550_v27 }
 0x25b   :  { %v1406_v13 = vadd.f32 %v1405_v8, %v1343_v25  ;;  %v1350_v8 = vmul.f32 %v2554_v32, %v2554_v32 }
 0x25d   :  { %v1407_v20 = vadd.f32 %v1406_v13, %v1344_v59  ;;  %v1351_v13 = vmul.f32 %v2558_v37, %v2558_v37 }
 0x25f   :  { %v1408_v24 = vadd.f32 %v1407_v20, %v1345_v12  ;;  %v1352_v20 = vmul.f32 %v2562_v42, %v2562_v42 }
 0x261   :  { %v1409_v9 = vadd.f32 %v1408_v24, %v1346_v19  ;;  %v1353_v24 = vmul.f32 %v2566_v47, %v2566_v47 }
 0x263   :  { %v1410_v34 = vadd.f32 %v1409_v9, %v1347_v28  ;;  %v1354_v9 = vmul.f32 %v2570_v52, %v2570_v52 }
 0x265   :  { %v1411_v25 = vadd.f32 %v1410_v34, %v1348_v11  ;;  %v1355_v34 = vmul.f32 %v2574_v57, %v2574_v57 }
 0x267   :  { %v1412_v59 = vadd.f32 %v1411_v25, %v1349_v49  ;;  %v1356_v25 = vmul.f32 %v2578_v62, %v2578_v62 }
 0x269   :  { %v1413_v12 = vadd.f32 %v1412_v59, %v1350_v8  ;;  %v1357_v59 = vmul.f32 %v2582_v3, %v2582_v3 }
 0x26b   :  { %v1414_v19 = vadd.f32 %v1413_v12, %v1351_v13  ;;  %v3731_v12 = vld [vmem:[#allocation22_spill] sm:$0xff] }
 0x26c   :  { %v1358_v47 = vmul.f32 %v3731_v12, %v3731_v12 }
 0x26d   :  { %v1415_v28 = vadd.f32 %v1414_v19, %v1352_v20  ;;  %v3732_v19 = vld [vmem:[#allocation23_spill] sm:$0xff] }
 0x26e   :  { %v1359_v52 = vmul.f32 %v3732_v19, %v3732_v19 }
 0x26f   :  { %v1416_v11 = vadd.f32 %v1415_v28, %v1353_v24  ;;  %v3733_v28 = vld [vmem:[#allocation24_spill] sm:$0xff] }
 0x270   :  { %v1360_v57 = vmul.f32 %v3733_v28, %v3733_v28 }
 0x271   :  { %v1417_v49 = vadd.f32 %v1416_v11, %v1354_v9  ;;  %v1361_v11 = vmul.f32 %v2598_v29, %v2598_v29 }
 0x273   :  { %v1418_v8 = vadd.f32 %v1417_v49, %v1355_v34  ;;  %v1362_v49 = vmul.f32 %v2602_v38, %v2602_v38 }
 0x275   :  { %v1419_v13 = vadd.f32 %v1418_v8, %v1356_v25  ;;  %v1363_v8 = vmul.f32 %v2606_v45, %v2606_v45 }
 0x277   :  { %v1420_v20 = vadd.f32 %v1419_v13, %v1357_v59  ;;  %v1364_v13 = vmul.f32 %v2610_v54, %v2610_v54 }
 0x279   :  { %v1421_v24 = vadd.f32 %v1420_v20, %v1358_v47  ;;  %v1365_v20 = vmul.f32 %v2614_v63, %v2614_v63 }
 0x27b   :  { %v1422_v9 = vadd.f32 %v1421_v24, %v1359_v52  ;;  %v1366_v24 = vmul.f32 %v2618_v6, %v2618_v6 }
 0x27d   :  { %v1423_v34 = vadd.f32 %v1422_v9, %v1360_v57  ;;  %v1367_v9 = vmul.f32 %v2622_v15, %v2622_v15 }
 0x27f   :  { %v1424_v25 = vadd.f32 %v1423_v34, %v1361_v11  ;;  %v1368_v34 = vmul.f32 %v2626_v30, %v2626_v30 }
 0x281   :  { %v1425_v59 = vadd.f32 %v1424_v25, %v1362_v49  ;;  %v3734_v25 = vld [vmem:[#allocation33_spill] sm:$0xff] }
 0x282   :  { %v1369_v54 = vmul.f32 %v3734_v25, %v3734_v25 }
 0x283   :  { %v1426_v47 = vadd.f32 %v1425_v59, %v1363_v8  ;;  %v3735_v59 = vld [vmem:[#allocation34_spill] sm:$0xff] }
 0x284   :  { %v1370_v63 = vmul.f32 %v3735_v59, %v3735_v59 }
 0x285   :  { %v1427_v52 = vadd.f32 %v1426_v47, %v1364_v13  ;;  %v3736_v47 = vld [vmem:[#allocation35_spill] sm:$0xff] }
 0x286   :  { %v1371_v6 = vmul.f32 %v3736_v47, %v3736_v47 }
 0x287   :  { %v1428_v57 = vadd.f32 %v1427_v52, %v1365_v20  ;;  %v3737_v52 = vld [vmem:[#allocation36_spill] sm:$0xff] }
 0x288   :  { %v1372_v15 = vmul.f32 %v3737_v52, %v3737_v52 }
 0x289   :  { %v1429_v11 = vadd.f32 %v1428_v57, %v1366_v24  ;;  %v1373_v57 = vmul.f32 %v2646_v48, %v2646_v48 }
 0x28b   :  { %v1430_v49 = vadd.f32 %v1429_v11, %v1367_v9 }
 0x28d   :  { %v1431_v8 = vadd.f32 %v1430_v49, %v1368_v34 }
 0x28f   :  { %v1432_v13 = vadd.f32 %v1431_v8, %v1369_v54 }
 0x291   :  { %v1433_v20 = vadd.f32 %v1432_v13, %v1370_v63  ;;  %v2781_v63 = vld [vmem:[%s3628_s2] ss:$0 sm:$0xff]  ;;  %s2113_s2 = smov [#allocation8]  }
 0x293   :  { %v1434_v24 = vadd.f32 %v1433_v20, %v1371_v6  ;;  %v2800_v20 = vld [vmem:[%s3629_s3] ss:$0 sm:$0xff]  ;;  %s1785_s3 = sshll.u32 %s2113_s2, 4  ;;  %s1786_s3 = int_to_ptr.vmem [resolvable:$true] %s1785_s3 }
 0x294   :  { %3741 = vst [vmem:[#allocation13_spill] sm:$0xff] %v2800_v20  ;;  %s2078_s19 = scalar_lea.vmem %s1786_s3, 8192  ;;  %p2083_p3 = scmp.lt.s32.totalorder %s1786_s3, %s1786_s3 }
 0x295   :  { %v1435_v9 = vadd.f32 %v1434_v24, %v1372_v15  ;;  %v3738_v15 = vld [vmem:[#allocation27_spill] sm:$0xff]  ;;  %p2079_p2 = scmp.ne.s32.totalorder %s1786_s3, %s2078_s19  ;;  %p2084_p4 = scmp.lt.s32.totalorder %s2078_s19, %s2078_s19 }
 0x297   :  { %v1436_v11 = vadd.f32 %v1435_v9, %v1373_v57  ;;  %p2085_p5 = por %p2084_p4, %p2083_p3 }
 0x299   :  { %v1437_v30 = vrot.slane %v1436_v11, 4  ;;  %p2086_p6 = pnand %p2085_p5, %p2079_p2 }
 0x29b   :  { %v1438_v25 = vadd.f32 %v1437_v30, %v1436_v11 }
 0x29d   :  { %v1439_v34 = vrot.slane %v1438_v25, 2 }
 0x29f   :  { %v1440_v49 = vadd.f32 %v1439_v34, %v1438_v25  ;;  %v3739_v25 = vld [vmem:[#allocation28_spill] sm:$0xff] }
 0x2a1   :  { %v1441_v45 = vrot.slane %v1440_v49, 1 }
 0x2a3   :  { %v1442_v59 = vadd.f32 %v1441_v45, %v1440_v49 }
 0x2a5   :  { %v1443_v54 = vmul.f32 0.001953125, %v1442_v59  ;;  %v3740_v59 = vld [vmem:[#allocation29_spill] sm:$0xff] }
 0x2a7   :  { %v1444_v8 = vadd.f32 1e-05, %v1443_v54 }
 0x2a9   :  { %2032 = vrsqrt.f32 %v1444_v8 }
 0x2b3   :  { %v2776_v47 = vpop.eup %2032 }
 0x2b4   :  { %v1509_v6 = vmul.f32 %v2776_v47, %v2646_v48  ;;  %v2787_v30 = vmul.f32 %v2776_v47, %v3738_v15  ;;  %v2791_v45 = vmul.f32 %v2776_v47, %v3739_v25  ;;  %v2795_v13 = vmul.f32 %v2776_v47, %v3740_v59 }
 0x2b5   :  { %v2804_v48 = vmul.f32 %v2776_v47, %v2406_v1  ;;  %v2808_v24 = vmul.f32 %v2776_v47, %v2410_v43  ;;  %v2812_v57 = vmul.f32 %v2776_v47, %v2414_v17  ;;  %v2816_v9 = vmul.f32 %v2776_v47, %v2418_v21 }
 0x2b6   :  { %v1580_v11 = vmul.f32 %v2781_v63, %v1509_v6  ;;  %v2821_v34 = vmul.f32 %v2776_v47, %v2422_v26  ;;  %v2825_v1 = vmul.f32 %v2776_v47, %v2426_v31  ;;  %v2829_v43 = vmul.f32 %v2776_v47, %v2430_v36  ;;  %v3744_v6 = vld [vmem:[#allocation12_spill] sm:$0xff] }
 0x2b7   :  { %v2833_v17 = vmul.f32 %v2776_v47, %v2434_v41  ;;  %v2837_v21 = vmul.f32 %v2776_v47, %v2438_v46  ;;  %v2841_v26 = vmul.f32 %v2776_v47, %v2442_v51  ;;  %v2845_v31 = vmul.f32 %v2776_v47, %v2446_v56  ;;  %v3742_v51 = vld [vmem:[#allocation30_spill] sm:$0xff]  ;;  %v3743_v56 = vld [vmem:[#allocation31_spill] sm:$0xff] }
 0x2b8   :  { %v1651_v49 = vadd.f32 %v2800_v20, %v1580_v11  ;;  %v2850_v36 = vmul.f32 %v2776_v47, %v2450_v61  ;;  %v2854_v41 = vmul.f32 %v2776_v47, %v2454_v2  ;;  %v2858_v46 = vmul.f32 %v2776_v47, %v2458_v7  ;;  %v3755_v20 = vld [vmem:[#allocation16_spill] sm:$0xff] }
 0x2b9   :  { %v2862_v54 = vmul.f32 %v2776_v47, %v3742_v51  ;;  %v2866_v8 = vmul.f32 %v2776_v47, %v3743_v56  ;;  %v2870_v61 = vmul.f32 %v2776_v47, %v3744_v6  ;;  %v2874_v2 = vmul.f32 %v2776_v47, %v2474_v35  ;;  %v3746_v51 = vld [vmem:[#allocation19_spill] sm:$0xff]  ;;  %v3747_v56 = vld [vmem:[#allocation21_spill] sm:$0xff] }
 0x2ba   :  { %v1715_v15 = vmax.f32 %v1651_v49, 0.0  ;;  %v2878_v7 = vmul.f32 %v2776_v47, %v2478_v44  ;;  %v2882_v25 = vmul.f32 %v2776_v47, %v3728_v10  ;;  %v2886_v59 = vmul.f32 %v2776_v47, %v3729_v33  ;;  %v3745_v49 = vld [vmem:[#allocation17_spill] sm:$0xff] }
 0x2bb   :  { %v2890_v11 = vmul.f32 %v2776_v47, %v3730_v50  ;;  %v2894_v35 = vmul.f32 %v2776_v47, %v2494_v39  ;;  %v2898_v44 = vmul.f32 %v2776_v47, %v2498_v0  ;;  %v2902_v10 = vmul.f32 %v2776_v47, %v2502_v14 }
 0x2bc   :  { %1779 = vst [vmem:[#allocation8 + $0x1f8] sm:$0xff] %v1715_v15  ;;  %v2906_v33 = vmul.f32 %v2776_v47, %v2506_v16  ;;  %v2910_v50 = vmul.f32 %v2776_v47, %v2510_v4  ;;  %v2914_v39 = vmul.f32 %v2776_v47, %v2514_v23  ;;  %v2918_v0 = vmul.f32 %v2776_v47, %v2518_v58 }
 0x2bd   :  { %v2922_v14 = vmul.f32 %v2776_v47, %v2522_v55  ;;  %v2926_v16 = vmul.f32 %v2776_v47, %v2526_v53  ;;  %v2930_v4 = vmul.f32 %v2776_v47, %v2530_v60  ;;  %v2934_v23 = vmul.f32 %v2776_v47, %v2534_v40 }
 0x2be   :  { %v2938_v58 = vmul.f32 %v2776_v47, %v2538_v5  ;;  %v2942_v55 = vmul.f32 %v2776_v47, %v2542_v18  ;;  %v2946_v53 = vmul.f32 %v2776_v47, %v2546_v22  ;;  %v2950_v60 = vmul.f32 %v2776_v47, %v2550_v27 }
 0x2bf   :  { %v2954_v40 = vmul.f32 %v2776_v47, %v2554_v32  ;;  %v2958_v5 = vmul.f32 %v2776_v47, %v2558_v37  ;;  %v2962_v18 = vmul.f32 %v2776_v47, %v2562_v42  ;;  %v2966_v22 = vmul.f32 %v2776_v47, %v3745_v49 }
 0x2c0   :  { %v2970_v27 = vmul.f32 %v2776_v47, %v3746_v51  ;;  %v2974_v32 = vmul.f32 %v2776_v47, %v3747_v56  ;;  %v2978_v37 = vmul.f32 %v2776_v47, %v2578_v62  ;;  %v2982_v42 = vmul.f32 %v2776_v47, %v2582_v3  ;;  %v3751_v51 = vld [vmem:[#allocation25_spill] sm:$0xff]  ;;  %v3753_v56 = vld [vmem:[#allocation26_spill] sm:$0xff] }
 0x2c1   :  { %v2986_v6 = vmul.f32 %v2776_v47, %v3731_v12  ;;  %v2990_v15 = vmul.f32 %v2776_v47, %v3732_v19  ;;  %v2994_v49 = vmul.f32 %v2776_v47, %v3733_v28  ;;  %v2998_v62 = vmul.f32 %v2776_v47, %v2598_v29 }
 0x2c2   :  { %v3002_v3 = vmul.f32 %v2776_v47, %v2602_v38  ;;  %v3006_v12 = vmul.f32 %v2776_v47, %v3751_v51  ;;  %v3010_v19 = vmul.f32 %v2776_v47, %v3753_v56  ;;  %v3014_v28 = vmul.f32 %v2776_v47, %v3755_v20 }
 0x2c3   :  { %3748 = vst [vmem:[#allocation14_spill] sm:$0xff] %v2994_v49  ;;  %3749 = vst [vmem:[#allocation15_spill] sm:$0xff] %v2998_v62  ;;  %v3757_v49 = vld [vmem:[#allocation18_spill] sm:$0xff]  ;;  %v3758_v62 = vld [vmem:[#allocation20_spill] sm:$0xff] }
 0x2c4   :  { %3750 = vst [vmem:[#allocation22_spill] sm:$0xff] %v3002_v3  ;;  %3752 = vst [vmem:[#allocation23_spill] sm:$0xff] %v3006_v12  ;;  %v3018_v29 = vmul.f32 %v2776_v47, %v3757_v49  ;;  %v3022_v38 = vmul.f32 %v2776_v47, %v3758_v62  ;;  %v3759_v3 = vld [vmem:[#allocation32_spill] sm:$0xff]  ;;  %v3760_v12 = vld [vmem:[#allocation33_spill] sm:$0xff]  ;;  %v3042_v62 = vmul.f32 %v2776_v47, %v3737_v52 }
 0x2c5   :  { %3754 = vst [vmem:[#allocation24_spill] sm:$0xff] %v3010_v19  ;;  %3756 = vst [vmem:[#allocation36_spill] sm:$0xff] %v3014_v28  ;;  %v3026_v51 = vmul.f32 %v2776_v47, %v3759_v3  ;;  %v3030_v56 = vmul.f32 %v2776_v47, %v3760_v12  ;;  %v3761_v19 = vld [vmem:[#allocation34_spill] sm:$0xff]  ;;  %v3762_v28 = vld [vmem:[#allocation35_spill] sm:$0xff]  ;;  %v3046_v3 = vmul.f32 %v2781_v63, %v2787_v30 }
 0x2c6   :  { %v3034_v20 = vmul.f32 %v2776_v47, %v3761_v19  ;;  %v3038_v49 = vmul.f32 %v2776_v47, %v3762_v28  ;;  %v3050_v12 = vmul.f32 %v2781_v63, %v2791_v45  ;;  %v3054_v19 = vmul.f32 %v2781_v63, %v2795_v13 }
 0x2c7   :  { %v3058_v28 = vmul.f32 %v2781_v63, %v2804_v48  ;;  %v3062_v47 = vmul.f32 %v2781_v63, %v2808_v24  ;;  %v3066_v52 = vmul.f32 %v2781_v63, %v2812_v57  ;;  %v3070_v30 = vmul.f32 %v2781_v63, %v2816_v9 }
 0x2c8   :  { %v3074_v45 = vmul.f32 %v2781_v63, %v2821_v34  ;;  %v3078_v13 = vmul.f32 %v2781_v63, %v2825_v1  ;;  %v3082_v48 = vmul.f32 %v2781_v63, %v2829_v43  ;;  %v3086_v24 = vmul.f32 %v2781_v63, %v2833_v17 }
 0x2c9   :  { %v3090_v57 = vmul.f32 %v2781_v63, %v2837_v21  ;;  %v3094_v9 = vmul.f32 %v2781_v63, %v2841_v26  ;;  %v3098_v34 = vmul.f32 %v2781_v63, %v2845_v31  ;;  %v3102_v1 = vmul.f32 %v2781_v63, %v2850_v36 }
 0x2ca   :  { %v3106_v43 = vmul.f32 %v2781_v63, %v2854_v41  ;;  %v3110_v17 = vmul.f32 %v2781_v63, %v2858_v46  ;;  %v3114_v21 = vmul.f32 %v2781_v63, %v2862_v54  ;;  %v3118_v26 = vmul.f32 %v2781_v63, %v2866_v8 }
 0x2cb   :  { %v3122_v31 = vmul.f32 %v2781_v63, %v2870_v61  ;;  %v3126_v36 = vmul.f32 %v2781_v63, %v2874_v2  ;;  %v3130_v41 = vmul.f32 %v2781_v63, %v2878_v7  ;;  %v3134_v46 = vmul.f32 %v2781_v63, %v2882_v25 }
 0x2cc   :  { %v3138_v54 = vmul.f32 %v2781_v63, %v2886_v59  ;;  %v3142_v8 = vmul.f32 %v2781_v63, %v2890_v11  ;;  %v3146_v61 = vmul.f32 %v2781_v63, %v2894_v35  ;;  %v3150_v2 = vmul.f32 %v2781_v63, %v2898_v44 }
 0x2cd   :  { %v3154_v7 = vmul.f32 %v2781_v63, %v2902_v10  ;;  %v3158_v25 = vmul.f32 %v2781_v63, %v2906_v33  ;;  %v3162_v59 = vmul.f32 %v2781_v63, %v2910_v50  ;;  %v3166_v11 = vmul.f32 %v2781_v63, %v2914_v39 }
 0x2ce   :  { %v3170_v35 = vmul.f32 %v2781_v63, %v2918_v0  ;;  %v3174_v44 = vmul.f32 %v2781_v63, %v2922_v14  ;;  %v3178_v10 = vmul.f32 %v2781_v63, %v2926_v16  ;;  %v3182_v33 = vmul.f32 %v2781_v63, %v2930_v4 }
 0x2cf   :  { %v3186_v50 = vmul.f32 %v2781_v63, %v2934_v23  ;;  %v3190_v39 = vmul.f32 %v2781_v63, %v2938_v58  ;;  %v3194_v0 = vmul.f32 %v2781_v63, %v2942_v55  ;;  %v3198_v14 = vmul.f32 %v2781_v63, %v2946_v53 }
 0x2d0   :  { %v3202_v16 = vmul.f32 %v2781_v63, %v2950_v60  ;;  %v3206_v4 = vmul.f32 %v2781_v63, %v2954_v40  ;;  %v3210_v23 = vmul.f32 %v2781_v63, %v2958_v5  ;;  %v3214_v58 = vmul.f32 %v2781_v63, %v2962_v18 }
 0x2d1   :  { %v3218_v55 = vmul.f32 %v2781_v63, %v2966_v22  ;;  %v3222_v53 = vmul.f32 %v2781_v63, %v2970_v27  ;;  %v3226_v60 = vmul.f32 %v2781_v63, %v2974_v32  ;;  %v3230_v40 = vmul.f32 %v2781_v63, %v2978_v37  ;;  %v3768_v27 = vld [vmem:[#allocation14_spill] sm:$0xff] }
 0x2d2   :  { %v3234_v5 = vmul.f32 %v2781_v63, %v2982_v42  ;;  %v3238_v18 = vmul.f32 %v2781_v63, %v2986_v6  ;;  %v3242_v22 = vmul.f32 %v2781_v63, %v2990_v15  ;;  %v3246_v32 = vmul.f32 %v2781_v63, %v3768_v27 }
 0x2d3   :  { %3763 = vst [vmem:[#allocation27_spill] sm:$0xff] %v3226_v60  ;;  %3764 = vst [vmem:[#allocation28_spill] sm:$0xff] %v3230_v40  ;;  %v3769_v60 = vld [vmem:[#allocation15_spill] sm:$0xff]  ;;  %v3770_v40 = vld [vmem:[#allocation22_spill] sm:$0xff] }
 0x2d4   :  { %3765 = vst [vmem:[#allocation29_spill] sm:$0xff] %v3234_v5  ;;  %3766 = vst [vmem:[#allocation30_spill] sm:$0xff] %v3238_v18  ;;  %v3250_v37 = vmul.f32 %v2781_v63, %v3769_v60  ;;  %v3254_v42 = vmul.f32 %v2781_v63, %v3770_v40  ;;  %v3771_v5 = vld [vmem:[#allocation23_spill] sm:$0xff]  ;;  %v3772_v18 = vld [vmem:[#allocation24_spill] sm:$0xff]  ;;  %v3270_v60 = vmul.f32 %v2781_v63, %v3018_v29 }
 0x2d5   :  { %3767 = vst [vmem:[#allocation31_spill] sm:$0xff] %v3242_v22  ;;  %v3258_v6 = vmul.f32 %v2781_v63, %v3771_v5  ;;  %v3262_v15 = vmul.f32 %v2781_v63, %v3772_v18  ;;  %v3773_v22 = vld [vmem:[#allocation36_spill] sm:$0xff]  ;;  %v3274_v40 = vmul.f32 %v2781_v63, %v3022_v38  ;;  %v3278_v5 = vmul.f32 %v2781_v63, %v3026_v51 }
 0x2d6   :  { %v3266_v27 = vmul.f32 %v2781_v63, %v3773_v22  ;;  %v3282_v18 = vmul.f32 %v2781_v63, %v3030_v56  ;;  %v3286_v22 = vmul.f32 %v2781_v63, %v3034_v20  ;;  %v3290_v29 = vmul.f32 %v2781_v63, %v3038_v49 }
 0x2d7   :  { %3774 = vst [vmem:[#allocation12_spill] sm:$0xff] %v3274_v40  ;;  %v3294_v38 = vmul.f32 %v2781_v63, %v3042_v62  ;;  %v3775_v40 = vld [vmem:[#allocation13_spill] sm:$0xff] }
 0x2d8   :  { %v3298_v51 = vadd.f32 %v3775_v40, %v3046_v3  ;;  %v3302_v56 = vadd.f32 %v3775_v40, %v3050_v12  ;;  %v3306_v20 = vadd.f32 %v3775_v40, %v3054_v19  ;;  %v3310_v49 = vadd.f32 %v3775_v40, %v3058_v28 }
 0x2d9   :  { %v3314_v63 = vadd.f32 %v3775_v40, %v3062_v47  ;;  %v3318_v62 = vadd.f32 %v3775_v40, %v3066_v52  ;;  %v3322_v3 = vadd.f32 %v3775_v40, %v3070_v30  ;;  %v3326_v12 = vadd.f32 %v3775_v40, %v3074_v45 }
 0x2da   :  { %v3330_v19 = vadd.f32 %v3775_v40, %v3078_v13  ;;  %v3334_v28 = vadd.f32 %v3775_v40, %v3082_v48  ;;  %v3338_v47 = vadd.f32 %v3775_v40, %v3086_v24  ;;  %v3342_v52 = vadd.f32 %v3775_v40, %v3090_v57 }
 0x2db   :  { %v3346_v30 = vadd.f32 %v3775_v40, %v3094_v9  ;;  %v3350_v45 = vadd.f32 %v3775_v40, %v3098_v34  ;;  %v3354_v13 = vadd.f32 %v3775_v40, %v3102_v1  ;;  %v3358_v48 = vadd.f32 %v3775_v40, %v3106_v43 }
 0x2dc   :  { %v3362_v24 = vadd.f32 %v3775_v40, %v3110_v17  ;;  %v3366_v57 = vadd.f32 %v3775_v40, %v3114_v21  ;;  %v3370_v9 = vadd.f32 %v3775_v40, %v3118_v26  ;;  %v3374_v34 = vadd.f32 %v3775_v40, %v3122_v31 }
 0x2dd   :  { %v3378_v1 = vadd.f32 %v3775_v40, %v3126_v36  ;;  %v3382_v43 = vadd.f32 %v3775_v40, %v3130_v41  ;;  %v3386_v17 = vadd.f32 %v3775_v40, %v3134_v46  ;;  %v3390_v21 = vadd.f32 %v3775_v40, %v3138_v54 }
 0x2de   :  { %v3394_v26 = vadd.f32 %v3775_v40, %v3142_v8  ;;  %v3398_v31 = vadd.f32 %v3775_v40, %v3146_v61  ;;  %v3402_v36 = vadd.f32 %v3775_v40, %v3150_v2  ;;  %v3406_v41 = vadd.f32 %v3775_v40, %v3154_v7 }
 0x2df   :  { %v3410_v46 = vadd.f32 %v3775_v40, %v3158_v25  ;;  %v3414_v54 = vadd.f32 %v3775_v40, %v3162_v59  ;;  %v3418_v8 = vadd.f32 %v3775_v40, %v3166_v11  ;;  %v3422_v61 = vadd.f32 %v3775_v40, %v3170_v35 }
 0x2e0   :  { %v3426_v2 = vadd.f32 %v3775_v40, %v3174_v44  ;;  %v3430_v7 = vadd.f32 %v3775_v40, %v3178_v10  ;;  %v3434_v25 = vadd.f32 %v3775_v40, %v3182_v33  ;;  %v3438_v59 = vadd.f32 %v3775_v40, %v3186_v50 }
 0x2e1   :  { %v3442_v11 = vadd.f32 %v3775_v40, %v3190_v39  ;;  %v3446_v35 = vadd.f32 %v3775_v40, %v3194_v0  ;;  %v3450_v44 = vadd.f32 %v3775_v40, %v3198_v14  ;;  %v3454_v10 = vadd.f32 %v3775_v40, %v3202_v16  ;;  %v3780_v16 = vld [vmem:[#allocation27_spill] sm:$0xff] }
 0x2e2   :  { %v3458_v33 = vadd.f32 %v3775_v40, %v3206_v4  ;;  %v3462_v50 = vadd.f32 %v3775_v40, %v3210_v23  ;;  %v3466_v39 = vadd.f32 %v3775_v40, %v3214_v58  ;;  %v3470_v0 = vadd.f32 %v3775_v40, %v3218_v55 }
 0x2e3   :  { %v3474_v14 = vadd.f32 %v3775_v40, %v3222_v53  ;;  %v3478_v4 = vadd.f32 %v3775_v40, %v3780_v16  ;;  %v3498_v16 = vadd.f32 %v3775_v40, %v3246_v32  ;;  %v3518_v32 = vadd.f32 %v3775_v40, %v3266_v27 }
 0x2e4   :  { %3776 = vst [vmem:[#allocation17_spill] sm:$0xff] %v3458_v33  ;;  %3777 = vst [vmem:[#allocation19_spill] sm:$0xff] %v3462_v50  ;;  %v3781_v33 = vld [vmem:[#allocation28_spill] sm:$0xff]  ;;  %v3782_v50 = vld [vmem:[#allocation29_spill] sm:$0xff]  ;;  %v3538_v27 = vadd.f32 %v3775_v40, %v3286_v22  ;;  %v1657_v22 = vmax.f32 %v3318_v62, 0.0  ;;  %v1668_v62 = vmax.f32 %v3362_v24, 0.0 }
 0x2e5   :  { %3778 = vst [vmem:[#allocation21_spill] sm:$0xff] %v3466_v39  ;;  %3779 = vst [vmem:[#allocation25_spill] sm:$0xff] %v3470_v0  ;;  %v3482_v23 = vadd.f32 %v3775_v40, %v3781_v33  ;;  %v3486_v58 = vadd.f32 %v3775_v40, %v3782_v50  ;;  %v3783_v39 = vld [vmem:[#allocation30_spill] sm:$0xff]  ;;  %v3784_v0 = vld [vmem:[#allocation31_spill] sm:$0xff]  ;;  %v3502_v33 = vadd.f32 %v3775_v40, %v3250_v37  ;;  %v1679_v24 = vmax.f32 %v3406_v41, 0.0 }
 0x2e6   :  { %v3490_v55 = vadd.f32 %v3775_v40, %v3783_v39  ;;  %v3494_v53 = vadd.f32 %v3775_v40, %v3784_v0  ;;  %v3506_v50 = vadd.f32 %v3775_v40, %v3254_v42  ;;  %v3510_v39 = vadd.f32 %v3775_v40, %v3258_v6  ;;  %3790 = vst [vmem:[#allocation32_spill] sm:$0xff] %v3538_v27 }
 0x2e7   :  { %3785 = vst [vmem:[#allocation26_spill] sm:$0xff] %v3502_v33  ;;  %v3514_v0 = vadd.f32 %v3775_v40, %v3262_v15  ;;  %v3522_v37 = vadd.f32 %v3775_v40, %v3270_v60  ;;  %v3786_v33 = vld [vmem:[#allocation12_spill] sm:$0xff]  ;;  %v3530_v6 = vadd.f32 %v3775_v40, %v3278_v5  ;;  %v3534_v15 = vadd.f32 %v3775_v40, %v3282_v18 }
 0x2e8   :  { %v3526_v42 = vadd.f32 %v3775_v40, %v3786_v33  ;;  %v3542_v60 = vadd.f32 %v3775_v40, %v3290_v29  ;;  %v3546_v33 = vadd.f32 %v3775_v40, %v3294_v38  ;;  %v1653_v5 = vmax.f32 %v3302_v56, 0.0  ;;  %1721 = vst [vmem:[#allocation8 + $0x28] sm:$0xff] %v1657_v22  ;;  %1732 = vst [vmem:[#allocation8 + $0x80] sm:$0xff] %v1668_v62 }
 0x2e9   :  { %3788 = vst [vmem:[#allocation18_spill] sm:$0xff] %v3530_v6  ;;  %3789 = vst [vmem:[#allocation20_spill] sm:$0xff] %v3534_v15  ;;  %v1654_v6 = vmax.f32 %v3306_v20, 0.0  ;;  %v1655_v18 = vmax.f32 %v3310_v49, 0.0  ;;  %v1656_v15 = vmax.f32 %v3314_v63, 0.0  ;;  %v1658_v27 = vmax.f32 %v3322_v3, 0.0 }
 0x2ea   :  { %3787 = vst [vmem:[#allocation16_spill] sm:$0xff] %v3526_v42  ;;  %3791 = vst [vmem:[#allocation33_spill] sm:$0xff] %v3542_v60  ;;  %v1652_v42 = vmax.f32 %v3298_v51, 0.0  ;;  %v1659_v29 = vmax.f32 %v3326_v12, 0.0  ;;  %v1660_v60 = vmax.f32 %v3330_v19, 0.0  ;;  %v1661_v40 = vmax.f32 %v3334_v28, 0.0 }
 0x2eb   :  { %v1662_v38 = vmax.f32 %v3338_v47, 0.0  ;;  %1717 = vst [vmem:[#allocation8 + $0x8] sm:$0xff] %v1653_v5  ;;  %1718 = vst [vmem:[#allocation8 + $0x10] sm:$0xff] %v1654_v6  ;;  %v1663_v51 = vmax.f32 %v3342_v52, 0.0  ;;  %v1664_v56 = vmax.f32 %v3346_v30, 0.0  ;;  %v1665_v20 = vmax.f32 %v3350_v45, 0.0 }
 0x2ec   :  { %1716 = vst [vmem:[#allocation8] sm:$0xff] %v1652_v42  ;;  %v1666_v49 = vmax.f32 %v3354_v13, 0.0  ;;  %1719 = vst [vmem:[#allocation8 + $0x18] sm:$0xff] %v1655_v18  ;;  %v1667_v63 = vmax.f32 %v3358_v48, 0.0  ;;  %v1669_v3 = vmax.f32 %v3366_v57, 0.0  ;;  %v1670_v12 = vmax.f32 %v3370_v9, 0.0 }
 0x2ed   :  { %1720 = vst [vmem:[#allocation8 + $0x20] sm:$0xff] %v1656_v15  ;;  %1722 = vst [vmem:[#allocation8 + $0x30] sm:$0xff] %v1658_v27  ;;  %v1671_v19 = vmax.f32 %v3374_v34, 0.0  ;;  %v1672_v28 = vmax.f32 %v3378_v1, 0.0  ;;  %v1673_v47 = vmax.f32 %v3382_v43, 0.0  ;;  %v1674_v52 = vmax.f32 %v3386_v17, 0.0 }
 0x2ee   :  { %1723 = vst [vmem:[#allocation8 + $0x38] sm:$0xff] %v1659_v29  ;;  %1724 = vst [vmem:[#allocation8 + $0x40] sm:$0xff] %v1660_v60  ;;  %v1675_v30 = vmax.f32 %v3390_v21, 0.0  ;;  %v1676_v45 = vmax.f32 %v3394_v26, 0.0  ;;  %v1677_v13 = vmax.f32 %v3398_v31, 0.0  ;;  %v1678_v48 = vmax.f32 %v3402_v36, 0.0 }
 0x2ef   :  { %1725 = vst [vmem:[#allocation8 + $0x48] sm:$0xff] %v1661_v40  ;;  %1726 = vst [vmem:[#allocation8 + $0x50] sm:$0xff] %v1662_v38  ;;  %v1680_v57 = vmax.f32 %v3410_v46, 0.0  ;;  %v1681_v9 = vmax.f32 %v3414_v54, 0.0  ;;  %v1682_v34 = vmax.f32 %v3418_v8, 0.0  ;;  %v1683_v1 = vmax.f32 %v3422_v61, 0.0 }
 0x2f0   :  { %1727 = vst [vmem:[#allocation8 + $0x58] sm:$0xff] %v1663_v51  ;;  %1728 = vst [vmem:[#allocation8 + $0x60] sm:$0xff] %v1664_v56  ;;  %v1684_v43 = vmax.f32 %v3426_v2, 0.0  ;;  %v1685_v17 = vmax.f32 %v3430_v7, 0.0  ;;  %v1686_v21 = vmax.f32 %v3434_v25, 0.0  ;;  %v1687_v26 = vmax.f32 %v3438_v59, 0.0 }
 0x2f1   :  { %1729 = vst [vmem:[#allocation8 + $0x68] sm:$0xff] %v1665_v20  ;;  %1730 = vst [vmem:[#allocation8 + $0x70] sm:$0xff] %v1666_v49  ;;  %v1688_v31 = vmax.f32 %v3442_v11, 0.0  ;;  %v1689_v36 = vmax.f32 %v3446_v35, 0.0  ;;  %v1690_v41 = vmax.f32 %v3450_v44, 0.0  ;;  %v1691_v46 = vmax.f32 %v3454_v10, 0.0 }
 0x2f2   :  { %1731 = vst [vmem:[#allocation8 + $0x78] sm:$0xff] %v1667_v63  ;;  %1733 = vst [vmem:[#allocation8 + $0x88] sm:$0xff] %v1669_v3  ;;  %v3792_v54 = vld [vmem:[#allocation17_spill] sm:$0xff]  ;;  %v3793_v61 = vld [vmem:[#allocation19_spill] sm:$0xff]  ;;  %v1696_v35 = vmax.f32 %v3474_v14, 0.0  ;;  %v1697_v44 = vmax.f32 %v3478_v4, 0.0 }
 0x2f3   :  { %1734 = vst [vmem:[#allocation8 + $0x90] sm:$0xff] %v1670_v12  ;;  %1735 = vst [vmem:[#allocation8 + $0x98] sm:$0xff] %v1671_v19  ;;  %v1692_v8 = vmax.f32 %v3792_v54, 0.0  ;;  %v1693_v2 = vmax.f32 %v3793_v61, 0.0  ;;  %v3794_v7 = vld [vmem:[#allocation21_spill] sm:$0xff]  ;;  %v1698_v42 = vmax.f32 %v3482_v23, 0.0 }
 0x2f4   :  { %1736 = vst [vmem:[#allocation8 + $0xa0] sm:$0xff] %v1672_v28  ;;  %1737 = vst [vmem:[#allocation8 + $0xa8] sm:$0xff] %v1673_v47  ;;  %v1694_v25 = vmax.f32 %v3794_v7, 0.0  ;;  %v3795_v59 = vld [vmem:[#allocation25_spill] sm:$0xff]  ;;  %v1699_v10 = vmax.f32 %v3486_v58, 0.0  ;;  %v1700_v6 = vmax.f32 %v3490_v55, 0.0 }
 0x2f5   :  { %1738 = vst [vmem:[#allocation8 + $0xb0] sm:$0xff] %v1674_v52  ;;  %1739 = vst [vmem:[#allocation8 + $0xb8] sm:$0xff] %v1675_v30  ;;  %v1695_v11 = vmax.f32 %v3795_v59, 0.0  ;;  %v1701_v15 = vmax.f32 %v3494_v53, 0.0  ;;  %v1702_v27 = vmax.f32 %v3498_v16, 0.0  ;;  %v3796_v14 = vld [vmem:[#allocation26_spill] sm:$0xff] }
 0x2f6   :  { %1740 = vst [vmem:[#allocation8 + $0xc0] sm:$0xff] %v1676_v45  ;;  %1741 = vst [vmem:[#allocation8 + $0xc8] sm:$0xff] %v1677_v13  ;;  %v1703_v4 = vmax.f32 %v3796_v14, 0.0  ;;  %v1704_v23 = vmax.f32 %v3506_v50, 0.0  ;;  %v1705_v60 = vmax.f32 %v3510_v39, 0.0  ;;  %v1706_v58 = vmax.f32 %v3514_v0, 0.0 }
 0x2f7   :  { %1742 = vst [vmem:[#allocation8 + $0xd0] sm:$0xff] %v1678_v48  ;;  %1743 = vst [vmem:[#allocation8 + $0xd8] sm:$0xff] %v1679_v24  ;;  %v1707_v55 = vmax.f32 %v3518_v32, 0.0  ;;  %v1708_v53 = vmax.f32 %v3522_v37, 0.0  ;;  %v3797_v16 = vld [vmem:[#allocation16_spill] sm:$0xff]  ;;  %v3798_v18 = vld [vmem:[#allocation18_spill] sm:$0xff] }
 0x2f8   :  { %1744 = vst [vmem:[#allocation8 + $0xe0] sm:$0xff] %v1680_v57  ;;  %1745 = vst [vmem:[#allocation8 + $0xe8] sm:$0xff] %v1681_v9  ;;  %v1709_v5 = vmax.f32 %v3797_v16, 0.0  ;;  %v1710_v22 = vmax.f32 %v3798_v18, 0.0  ;;  %v3799_v50 = vld [vmem:[#allocation20_spill] sm:$0xff]  ;;  %v3801_v40 = vld [vmem:[#allocation33_spill] sm:$0xff] }
 0x2f9   :  { %1746 = vst [vmem:[#allocation8 + $0xf0] sm:$0xff] %v1682_v34  ;;  %1747 = vst [vmem:[#allocation8 + $0xf8] sm:$0xff] %v1683_v1  ;;  %v1711_v39 = vmax.f32 %v3799_v50, 0.0  ;;  %v3800_v29 = vld [vmem:[#allocation32_spill] sm:$0xff]  ;;  %v1713_v38 = vmax.f32 %v3801_v40, 0.0  ;;  %v1714_v51 = vmax.f32 %v3546_v33, 0.0 }
 0x2fa   :  { %1748 = vst [vmem:[#allocation8 + $0x100] sm:$0xff] %v1684_v43  ;;  %1749 = vst [vmem:[#allocation8 + $0x108] sm:$0xff] %v1685_v17  ;;  %v1712_v0 = vmax.f32 %v3800_v29, 0.0 }
 0x2fb   :  { %1750 = vst [vmem:[#allocation8 + $0x110] sm:$0xff] %v1686_v21  ;;  %1751 = vst [vmem:[#allocation8 + $0x118] sm:$0xff] %v1687_v26 }
 0x2fc   :  { %1752 = vst [vmem:[#allocation8 + $0x120] sm:$0xff] %v1688_v31  ;;  %1753 = vst [vmem:[#allocation8 + $0x128] sm:$0xff] %v1689_v36 }
 0x2fd   :  { %1754 = vst [vmem:[#allocation8 + $0x130] sm:$0xff] %v1690_v41  ;;  %1755 = vst [vmem:[#allocation8 + $0x138] sm:$0xff] %v1691_v46 }
 0x2fe   :  { %1756 = vst [vmem:[#allocation8 + $0x140] sm:$0xff] %v1692_v8  ;;  %1757 = vst [vmem:[#allocation8 + $0x148] sm:$0xff] %v1693_v2 }
 0x2ff   :  { %1758 = vst [vmem:[#allocation8 + $0x150] sm:$0xff] %v1694_v25  ;;  %1759 = vst [vmem:[#allocation8 + $0x158] sm:$0xff] %v1695_v11 }
 0x300   :  { %1760 = vst [vmem:[#allocation8 + $0x160] sm:$0xff] %v1696_v35  ;;  %1761 = vst [vmem:[#allocation8 + $0x168] sm:$0xff] %v1697_v44 }
 0x301   :  { %1762 = vst [vmem:[#allocation8 + $0x170] sm:$0xff] %v1698_v42  ;;  %1763 = vst [vmem:[#allocation8 + $0x178] sm:$0xff] %v1699_v10 }
 0x302   :  { %1764 = vst [vmem:[#allocation8 + $0x180] sm:$0xff] %v1700_v6  ;;  %1765 = vst [vmem:[#allocation8 + $0x188] sm:$0xff] %v1701_v15 }
 0x303   :  { %1766 = vst [vmem:[#allocation8 + $0x190] sm:$0xff] %v1702_v27  ;;  %1767 = vst [vmem:[#allocation8 + $0x198] sm:$0xff] %v1703_v4 }
 0x304   :  { %1768 = vst [vmem:[#allocation8 + $0x1a0] sm:$0xff] %v1704_v23  ;;  %1769 = vst [vmem:[#allocation8 + $0x1a8] sm:$0xff] %v1705_v60 }
 0x305   :  { %1770 = vst [vmem:[#allocation8 + $0x1b0] sm:$0xff] %v1706_v58  ;;  %1771 = vst [vmem:[#allocation8 + $0x1b8] sm:$0xff] %v1707_v55 }
 0x306   :  { %1772 = vst [vmem:[#allocation8 + $0x1c0] sm:$0xff] %v1708_v53  ;;  %1773 = vst [vmem:[#allocation8 + $0x1c8] sm:$0xff] %v1709_v5 }
 0x307   :  { %1774 = vst [vmem:[#allocation8 + $0x1d0] sm:$0xff] %v1710_v22  ;;  %1775 = vst [vmem:[#allocation8 + $0x1d8] sm:$0xff] %v1711_v39 }
 0x308   :  { %1776 = vst [vmem:[#allocation8 + $0x1e0] sm:$0xff] %v1712_v0  ;;  %1777 = vst [vmem:[#allocation8 + $0x1e8] sm:$0xff] %v1713_v38 }
 0x309   :  { %1778 = vst [vmem:[#allocation8 + $0x1f0] sm:$0xff] %v1714_v51 }
 0x30a   :  { %2089 = shalt.err (!%p2086_p6)
}
 0x30b   :  { %s2090_s22 = scalar_lea.hbm %s3630_s4, 8192 }
 0x30c   :  { %p2091_p7 = scmp.ne.s32.totalorder %s3630_s4, %s2090_s22  ;;  %p2094_p8 = scmp.lt.u32.totalorder %s2090_s22, %s3630_s4 }
 0x30e   :  { %p2096_p9 = pnand %p2094_p8, %p2091_p7 }
 0x310   :  { %2099 = shalt.err (!%p2096_p9)
}
 0x311   :  { %1791 = dma.vmem_to_hbm [thread:$0]  %s1786_s3, 8192, %s3630_s4, [#allocation5], %s2107_s25, %s2107_s25, %s2108_s26  }
 0x312   :  { %2104 = dma.done.wait [#allocation5], 8192  }
 0x313   :  { %2105 = vsyncadd [#allocation5], 4294959104 }
 0x314   :  { %1795 = vsyncpa [#allocation4], 1 }
 0x315   :  { %1796 = vsyncpa [#allocation7], 1 }
 0x316   :  { %1797 = vsyncpa [#allocation5], 1 }

</bundles_post_ra>
